<compile_context>
chip_gen: v6e
topology: v6e:2x2x1
jax: 0.10.0
libtpu: 0.0.40
codegen_flags: <defaults>
</compile_context>

<pallas_src>
import functools

import jax
import jax.numpy as jnp
from jax.experimental import pallas as pl
from jax.experimental.pallas import tpu as pltpu


# --------------------------------------------------------------------------
# Tile-size helpers (lane dims must be a multiple of 128 or the full dim;
# sublane dims a multiple of 8 or the full dim).
# --------------------------------------------------------------------------
def _tile_lane(dim, target):
    t = target
    while t >= 128:
        if dim % t == 0:
            return t
        t //= 2
    return dim


def _tile_sub(dim, target):
    t = target
    while t >= 8:
        if dim % t == 0:
            return t
        t //= 2
    return dim


# --------------------------------------------------------------------------
# In-kernel math helpers
# --------------------------------------------------------------------------
def _gelu_exact(x):
    # Exact (erf-based) GELU matching torch.nn.GELU() (not the tanh approx).
    # erf via Abramowitz & Stegun 7.1.26 (|err| < 1.5e-7); only exp/mul/add/where.
    z = x * 0.7071067811865476
    a = jnp.abs(z)
    t = 1.0 / (1.0 + 0.3275911 * a)
    poly = t * (0.254829592 + t * (-0.284496736 + t * (1.421413741
                + t * (-1.453152027 + t * 1.061405429))))
    erf_abs = 1.0 - poly * jnp.exp(-a * a)
    erf = jnp.where(z >= 0.0, erf_abs, -erf_abs)
    return 0.5 * x * (1.0 + erf)


def _layernorm(x, gamma, beta, eps=1e-5):
    mu = jnp.mean(x, axis=-1, keepdims=True)
    xc = x - mu
    var = jnp.mean(xc * xc, axis=-1, keepdims=True)
    return xc * jax.lax.rsqrt(var + eps) * gamma + beta


# --------------------------------------------------------------------------
# Kernels
# --------------------------------------------------------------------------
def _mm_kernel(x_ref, w_ref, b_ref, o_ref, acc_ref, *, activation):
    """K-tiled matmul: y = act(x @ w + b). Grid (M, N, K); acc in VMEM."""
    k = pl.program_id(2)

    @pl.when(k == 0)
    def _():
        acc_ref[...] = jnp.zeros_like(acc_ref)

    acc_ref[...] += jnp.dot(x_ref[...], w_ref[...],
                            preferred_element_type=jnp.float32)

    @pl.when(k == pl.num_programs(2) - 1)
    def _():
        y = acc_ref[...] + b_ref[...].astype(jnp.float32)
        if activation == "gelu":
            y = _gelu_exact(y)
        o_ref[...] = y.astype(o_ref.dtype)


def _mm_res_kernel(x_ref, w_ref, b_ref, r_ref, o_ref, acc_ref):
    """K-tiled matmul with fused residual add: y = x @ w + b + r."""
    k = pl.program_id(2)

    @pl.when(k == 0)
    def _():
        acc_ref[...] = jnp.zeros_like(acc_ref)

    acc_ref[...] += jnp.dot(x_ref[...], w_ref[...],
                            preferred_element_type=jnp.float32)

    @pl.when(k == pl.num_programs(2) - 1)
    def _():
        y = acc_ref[...] + b_ref[...].astype(jnp.float32) \
            + r_ref[...].astype(jnp.float32)
        o_ref[...] = y.astype(o_ref.dtype)


def _ln_mm_kernel(x_ref, g_ref, bt_ref, w_ref, b_ref, o_ref, *, activation):
    """Fused LayerNorm + matmul: y = act(LN(x) @ w + b).
    Grid (M, N); x block carries the full feature dim (LN needs full-row stats)."""
    x = x_ref[...].astype(jnp.float32)
    xn = _layernorm(x, g_ref[...].astype(jnp.float32),
                    bt_ref[...].astype(jnp.float32))
    y = jnp.dot(xn, w_ref[...], preferred_element_type=jnp.float32)
    y = y + b_ref[...].astype(jnp.float32)
    if activation == "gelu":
        y = _gelu_exact(y)
    o_ref[...] = y.astype(o_ref.dtype)


def _flash_attn_kernel(q_ref, k_ref, v_ref, o_ref, m_sc, l_sc, acc_sc, *, sm_scale):
    """Flash-style attention with online softmax. Grid (B*H, Sq/tq, Sk/tk)."""
    ki = pl.program_id(2)

    @pl.when(ki == 0)
    def _():
        m_sc[...] = jnp.full_like(m_sc, -jnp.inf)
        l_sc[...] = jnp.zeros_like(l_sc)
        acc_sc[...] = jnp.zeros_like(acc_sc)

    # Fold 1/sqrt(Dh) into q (S x Dh work instead of S x S).
    q = q_ref[0].astype(jnp.float32) * sm_scale        # (tq, Dh)
    k = k_ref[0].astype(jnp.float32)                   # (tk, Dh)
    v = v_ref[0].astype(jnp.float32)                   # (tk, Dh)

    s = jax.lax.dot_general(q, k, (((1,), (1,)), ((), ())),
                            preferred_element_type=jnp.float32)   # (tq, tk)

    m_prev = m_sc[...]
    m_new = jnp.maximum(m_prev, jnp.max(s, axis=-1, keepdims=True))
    alpha = jnp.exp(m_prev - m_new)
    p = jnp.exp(s - m_new)
    l_sc[...] = alpha * l_sc[...] + jnp.sum(p, axis=-1, keepdims=True)
    acc_sc[...] = alpha * acc_sc[...] + jnp.dot(p, v,
                                                preferred_element_type=jnp.float32)
    m_sc[...] = m_new

    @pl.when(ki == pl.num_programs(2) - 1)
    def _():
        inv = pl.reciprocal(l_sc[...], approx=True)    # EUP slot, epilogue-only
        o_ref[0] = (acc_sc[...] * inv).astype(o_ref.dtype)


# --------------------------------------------------------------------------
# Pallas wrappers
# --------------------------------------------------------------------------
def linear(x, w, b, *, activation=None, residual=None, tm=256, tn=256, tk=512):
    """y = act(x @ w + b) (+ optional fused residual add). x: (N, Din)."""
    N, Din = x.shape
    Dout = w.shape[1]
    tm = _tile_sub(N, tm)
    tn = _tile_lane(Dout, tn)
    tk = _tile_lane(Din, tk)
    grid = (N // tm, Dout // tn, Din // tk)

    in_specs = [
        pl.BlockSpec((tm, tk), lambda i, j, k: (i, k)),
        pl.BlockSpec((tk, tn), lambda i, j, k: (k, j)),
        pl.BlockSpec((1, tn), lambda i, j, k: (0, j)),
    ]
    args = [x, w, b.reshape(1, Dout)]
    if residual is not None:
        kernel = _mm_res_kernel
        in_specs.append(pl.BlockSpec((tm, tn), lambda i, j, k: (i, j)))
        args.append(residual)
    else:
        kernel = functools.partial(_mm_kernel, activation=activation)

    return pl.pallas_call(
        kernel,
        out_shape=jax.ShapeDtypeStruct((N, Dout), x.dtype),
        grid=grid,
        in_specs=in_specs,
        out_specs=pl.BlockSpec((tm, tn), lambda i, j, k: (i, j)),
        scratch_shapes=[pltpu.VMEM((tm, tn), jnp.float32)],
        compiler_params=pltpu.CompilerParams(
            dimension_semantics=("parallel", "parallel", "arbitrary")),
    )(*args)


def ln_linear(x, gamma, beta, w, b, *, activation=None, tm=256, tn=256):
    """Fused LayerNorm + linear: y = act(LN(x) @ w + b). x: (N, Din)."""
    N, Din = x.shape
    Dout = w.shape[1]
    tm = _tile_sub(N, tm)
    tn = _tile_lane(Dout, tn)
    grid = (N // tm, Dout // tn)

    return pl.pallas_call(
        functools.partial(_ln_mm_kernel, activation=activation),
        out_shape=jax.ShapeDtypeStruct((N, Dout), x.dtype),
        grid=grid,
        in_specs=[
            pl.BlockSpec((tm, Din), lambda i, j: (i, 0)),
            pl.BlockSpec((1, Din), lambda i, j: (0, 0)),
            pl.BlockSpec((1, Din), lambda i, j: (0, 0)),
            pl.BlockSpec((Din, tn), lambda i, j: (0, j)),
            pl.BlockSpec((1, tn), lambda i, j: (0, j)),
        ],
        out_specs=pl.BlockSpec((tm, tn), lambda i, j: (i, j)),
        compiler_params=pltpu.CompilerParams(
            dimension_semantics=("parallel", "parallel")),
    )(x, gamma.reshape(1, Din), beta.reshape(1, Din), w, b.reshape(1, Dout))


def flash_attention(q, k, v, *, tq=128, tk=128):
    """softmax(q k^T / sqrt(Dh)) v with online softmax.  q,k,v: (B*H, S, Dh)."""
    BH, S, Dh = q.shape
    sm_scale = 1.0 / float(Dh) ** 0.5
    tq = _tile_sub(S, tq)
    tk = _tile_sub(S, tk)
    grid = (BH, S // tq, S // tk)

    q_spec = pl.BlockSpec((1, tq, Dh), lambda b, qi, ki: (b, qi, 0))
    kv_spec = pl.BlockSpec((1, tk, Dh), lambda b, qi, ki: (b, ki, 0))

    return pl.pallas_call(
        functools.partial(_flash_attn_kernel, sm_scale=sm_scale),
        out_shape=jax.ShapeDtypeStruct((BH, S, Dh), q.dtype),
        grid=grid,
        in_specs=[q_spec, kv_spec, kv_spec],
        out_specs=q_spec,
        scratch_shapes=[
            pltpu.VMEM((tq, 1), jnp.float32),    # running max
            pltpu.VMEM((tq, 1), jnp.float32),    # running denom
            pltpu.VMEM((tq, Dh), jnp.float32),   # output accumulator
        ],
        compiler_params=pltpu.CompilerParams(
            dimension_semantics=("parallel", "parallel", "arbitrary")),
    )(q, k, v)


# --------------------------------------------------------------------------
# Parameter init (deterministic, synthetic) and forward pass
# --------------------------------------------------------------------------
def init_params(key, input_dim, embed_dim, num_layers, num_heads, mlp_ratio):
    assert embed_dim % num_heads == 0
    hidden = int(embed_dim * mlp_ratio)

    def w(key, shape):
        return (0.02 * jax.random.normal(key, shape)).astype(jnp.float32)

    keys = jax.random.split(key, 2 + 4 * num_layers)
    params = {
        "num_heads": num_heads,
        "embed_w": w(keys[0], (input_dim, embed_dim)),
        "embed_b": jnp.zeros((embed_dim,), jnp.float32),
        "final_ln_g": jnp.ones((input_dim,), jnp.float32),
        "final_ln_b": jnp.zeros((input_dim,), jnp.float32),
        "proj_w": w(keys[1], (embed_dim, input_dim)),
        "proj_b": jnp.zeros((input_dim,), jnp.float32),
        "blocks": [],
    }
    for l in range(num_layers):
        k0, k1, k2, k3 = keys[2 + 4 * l: 2 + 4 * (l + 1)]
        params["blocks"].append({
            "ln1_g": jnp.ones((embed_dim,), jnp.float32),
            "ln1_b": jnp.zeros((embed_dim,), jnp.float32),
            "qkv_w": w(k0, (embed_dim, 3 * embed_dim)),
            "qkv_b": jnp.zeros((3 * embed_dim,), jnp.float32),
            "proj_w": w(k1, (embed_dim, embed_dim)),
            "proj_b": jnp.zeros((embed_dim,), jnp.float32),
            "ln2_g": jnp.ones((embed_dim,), jnp.float32),
            "ln2_b": jnp.zeros((embed_dim,), jnp.float32),
            "fc1_w": w(k2, (embed_dim, hidden)),
            "fc1_b": jnp.zeros((hidden,), jnp.float32),
            "fc2_w": w(k3, (hidden, embed_dim)),
            "fc2_b": jnp.zeros((embed_dim,), jnp.float32),
        })
    return params


def vit_predictor_forward(params, x):
    """x: (B, S, input_dim) -> (B, S, input_dim)."""
    B, S, Din = x.shape
    E = params["embed_w"].shape[1]
    H = params["num_heads"]
    Dh = E // H
    N = B * S

    # predictor_embed
    h = linear(x.reshape(N, Din), params["embed_w"], params["embed_b"])

    # transformer_blocks (pre-norm encoder), 4 pallas_calls per block
    for blk in params["blocks"]:
        # LN1 + QKV projection (fused)
        qkv = ln_linear(h, blk["ln1_g"], blk["ln1_b"],
                        blk["qkv_w"], blk["qkv_b"])                   # (N, 3E)
        qkv = qkv.reshape(B, S, 3, H, Dh).transpose(2, 0, 3, 1, 4)    # (3,B,H,S,Dh)
        q = qkv[0].reshape(B * H, S, Dh)
        k = qkv[1].reshape(B * H, S, Dh)
        v = qkv[2].reshape(B * H, S, Dh)

        attn = flash_attention(q, k, v)                               # (B*H,S,Dh)
        attn = attn.reshape(B, H, S, Dh).transpose(0, 2, 1, 3).reshape(N, E)

        # attention output projection + residual add (fused)
        h = linear(attn, blk["proj_w"], blk["proj_b"], residual=h)

        # LN2 + FC1 + GELU (fused), then FC2 + residual add (fused)
        m = ln_linear(h, blk["ln2_g"], blk["ln2_b"],
                      blk["fc1_w"], blk["fc1_b"], activation="gelu")
        h = linear(m, blk["fc2_w"], blk["fc2_b"], residual=h)

    # final_layernorm + predictor_projector (fused)
    out = ln_linear(h, params["final_ln_g"], params["final_ln_b"],
                    params["proj_w"], params["proj_b"])
    return out.reshape(B, S, Din)


# --------------------------------------------------------------------------
# Pure-JAX reference (for a numerical sanity check)
# --------------------------------------------------------------------------
def _reference_forward(params, x):
    B, S, Din = x.shape
    H = params["num_heads"]
    E = params["embed_w"].shape[1]
    Dh = E // H

    def ln(z, g, b):
        mu = jnp.mean(z, -1, keepdims=True)
        var = jnp.mean((z - mu) ** 2, -1, keepdims=True)
        return (z - mu) * jax.lax.rsqrt(var + 1e-5) * g + b

    h = x @ params["embed_w"] + params["embed_b"]
    for blk in params["blocks"]:
        hn = ln(h, blk["ln1_g"], blk["ln1_b"])
        qkv = hn @ blk["qkv_w"] + blk["qkv_b"]
        qkv = qkv.reshape(B, S, 3, H, Dh).transpose(2, 0, 3, 1, 4)
        q, k, v = qkv[0], qkv[1], qkv[2]
        s = jnp.einsum("bhqd,bhkd->bhqk", q, k) / jnp.sqrt(jnp.float32(Dh))
        p = jax.nn.softmax(s, axis=-1)
        a = jnp.einsum("bhqk,bhkd->bhqd", p, v).transpose(0, 2, 1, 3).reshape(B, S, E)
        h = h + (a @ blk["proj_w"] + blk["proj_b"])
        hn = ln(h, blk["ln2_g"], blk["ln2_b"])
        m = jax.nn.gelu(hn @ blk["fc1_w"] + blk["fc1_b"], approximate=False)
        h = h + (m @ blk["fc2_w"] + blk["fc2_b"])
    h = ln(h, params["final_ln_g"], params["final_ln_b"])
    return h @ params["proj_w"] + params["proj_b"]


# --------------------------------------------------------------------------
if __name__ == "__main__":
    B, S = 2, 8
    INPUT_DIM = 32            # must equal embed dim (see NOTE above)
    EMBED_DIM = 32
    NUM_LAYERS = 2
    NUM_HEADS = 4
    MLP_RATIO = 2.0

    root = jax.random.PRNGKey(0)
    k_params, k_x = jax.random.split(root)
    params = init_params(k_params, INPUT_DIM, EMBED_DIM, NUM_LAYERS, NUM_HEADS, MLP_RATIO)
    x = jax.random.normal(k_x, (B, S, INPUT_DIM), dtype=jnp.float32)

    fwd = jax.jit(functools.partial(vit_predictor_forward, params))
    y = fwd(x)
    jax.block_until_ready(y)
    assert y.shape == (B, S, INPUT_DIM) and y.dtype == jnp.float32
    assert bool(jnp.all(jnp.isfinite(y)))

    # Numerical sanity vs. pure-JAX reference (tolerance accommodates the
    # approx EUP reciprocal in the attention epilogue and the erf polynomial).
    y_ref = _reference_forward(params, x)
    assert bool(jnp.allclose(y, y_ref, atol=5e-3, rtol=5e-3)), (
        float(jnp.max(jnp.abs(y - y_ref))))

    print("KERNEL_OK")
</pallas_src>

<mosaic_0001>
module attributes {stable_mosaic.version = 11 : i64} {
  func.func @_ln_mm_kernel(%arg0: i32, %arg1: i32, %arg2: memref<16x32xf32, #tpu.memory_space<vmem>>, %arg3: memref<1x32xf32, #tpu.memory_space<vmem>>, %arg4: memref<1x32xf32, #tpu.memory_space<vmem>>, %arg5: memref<32x96xf32, #tpu.memory_space<vmem>>, %arg6: memref<1x96xf32, #tpu.memory_space<vmem>>, %arg7: memref<16x96xf32, #tpu.memory_space<vmem>>) attributes {dimension_semantics = [#tpu.dimension_semantics<parallel>, #tpu.dimension_semantics<parallel>], iteration_bounds = array<i64: 1, 1>, scalar_prefetch = 0 : i64, scratch_operands = 0 : i64, tpu.core_type = #tpu.core_type<tc>, window_params = [{transform_indices = @transform_0, window_bounds = array<i64: 16, 32>}, {pipeline_mode = #tpu.pipeline_mode<synchronous>, transform_indices = @transform_1, window_bounds = array<i64: 1, 32>}, {pipeline_mode = #tpu.pipeline_mode<synchronous>, transform_indices = @transform_2, window_bounds = array<i64: 1, 32>}, {transform_indices = @transform_3, window_bounds = array<i64: 32, 96>}, {transform_indices = @transform_4, window_bounds = array<i64: 1, 96>}, {transform_indices = @transform_5, window_bounds = array<i64: 16, 96>}]} {
    %c0 = arith.constant 0 : index
    %c0_0 = arith.constant 0 : index
    %0 = vector.load %arg2[%c0, %c0_0] : memref<16x32xf32, #tpu.memory_space<vmem>>, vector<16x32xf32>
    %c0_1 = arith.constant 0 : index
    %c0_2 = arith.constant 0 : index
    %1 = vector.load %arg3[%c0_1, %c0_2] : memref<1x32xf32, #tpu.memory_space<vmem>>, vector<1x32xf32>
    %c0_3 = arith.constant 0 : index
    %c0_4 = arith.constant 0 : index
    %2 = vector.load %arg4[%c0_3, %c0_4] : memref<1x32xf32, #tpu.memory_space<vmem>>, vector<1x32xf32>
    %cst = arith.constant dense<0.000000e+00> : vector<16xf32>
    %3 = vector.multi_reduction <add>, %0, %cst [1] : vector<16x32xf32> to vector<16xf32>
    %4 = vector.shape_cast %3 : vector<16xf32> to vector<16x1xf32>
    %cst_5 = arith.constant 3.200000e+01 : f32
    %5 = vector.broadcast %cst_5 : f32 to vector<16x1xf32>
    %6 = arith.divf %4, %5 : vector<16x1xf32>
    %7 = vector.broadcast %6 : vector<16x1xf32> to vector<16x32xf32>
    %8 = arith.subf %0, %7 : vector<16x32xf32>
    %9 = arith.mulf %8, %8 : vector<16x32xf32>
    %cst_6 = arith.constant dense<0.000000e+00> : vector<16xf32>
    %10 = vector.multi_reduction <add>, %9, %cst_6 [1] : vector<16x32xf32> to vector<16xf32>
    %11 = vector.shape_cast %10 : vector<16xf32> to vector<16x1xf32>
    %cst_7 = arith.constant 3.200000e+01 : f32
    %12 = vector.broadcast %cst_7 : f32 to vector<16x1xf32>
    %13 = arith.divf %11, %12 : vector<16x1xf32>
    %cst_8 = arith.constant 9.99999974E-6 : f32
    %14 = vector.broadcast %cst_8 : f32 to vector<16x1xf32>
    %15 = arith.addf %13, %14 : vector<16x1xf32>
    %16 = math.rsqrt %15 : vector<16x1xf32>
    %17 = vector.broadcast %16 : vector<16x1xf32> to vector<16x32xf32>
    %18 = arith.mulf %8, %17 : vector<16x32xf32>
    %19 = vector.broadcast %1 : vector<1x32xf32> to vector<16x32xf32>
    %20 = arith.mulf %18, %19 : vector<16x32xf32>
    %21 = vector.broadcast %2 : vector<1x32xf32> to vector<16x32xf32>
    %22 = arith.addf %20, %21 : vector<16x32xf32>
    %c0_9 = arith.constant 0 : index
    %c0_10 = arith.constant 0 : index
    %23 = vector.load %arg5[%c0_9, %c0_10] : memref<32x96xf32, #tpu.memory_space<vmem>>, vector<32x96xf32>
    %cst_11 = arith.constant dense<0.000000e+00> : vector<16x96xf32>
    %24 = tpu.matmul %22, %23, %cst_11 {dimension_numbers = #tpu.dot_dimension_numbers<[1], [0], [0], [1], [0, 0, 1, 1], [], []>} : vector<16x32xf32>, vector<32x96xf32>, vector<16x96xf32> -> vector<16x96xf32>
    %c0_12 = arith.constant 0 : index
    %c0_13 = arith.constant 0 : index
    %25 = vector.load %arg6[%c0_12, %c0_13] : memref<1x96xf32, #tpu.memory_space<vmem>>, vector<1x96xf32>
    %26 = vector.broadcast %25 : vector<1x96xf32> to vector<16x96xf32>
    %27 = arith.addf %24, %26 : vector<16x96xf32>
    %c0_14 = arith.constant 0 : index
    %c0_15 = arith.constant 0 : index
    %28 = vector.load %arg7[%c0_14, %c0_15] : memref<16x96xf32, #tpu.memory_space<vmem>>, vector<16x96xf32>
    tpu.vector_store %arg7[%c0_14, %c0_15], %27 {strides = array<i32>} : memref<16x96xf32, #tpu.memory_space<vmem>>, vector<16x96xf32>,
    return
  }
  func.func @transform_0(%arg0: i32, %arg1: i32) -> (i32, i32) {
    %c0_i32 = arith.constant 0 : i32
    %c0_i32_0 = arith.constant 0 : i32
    return %arg0, %c0_i32 : i32, i32
  }
  func.func @transform_1(%arg0: i32, %arg1: i32) -> (i32, i32) {
    %c0_i32 = arith.constant 0 : i32
    %c0_i32_0 = arith.constant 0 : i32
    %c0_i32_1 = arith.constant 0 : i32
    return %c0_i32, %c0_i32_0 : i32, i32
  }
  func.func @transform_2(%arg0: i32, %arg1: i32) -> (i32, i32) {
    %c0_i32 = arith.constant 0 : i32
    %c0_i32_0 = arith.constant 0 : i32
    %c0_i32_1 = arith.constant 0 : i32
    return %c0_i32, %c0_i32_0 : i32, i32
  }
  func.func @transform_3(%arg0: i32, %arg1: i32) -> (i32, i32) {
    %c0_i32 = arith.constant 0 : i32
    %c0_i32_0 = arith.constant 0 : i32
    return %c0_i32, %arg1 : i32, i32
  }
  func.func @transform_4(%arg0: i32, %arg1: i32) -> (i32, i32) {
    %c0_i32 = arith.constant 0 : i32
    %c0_i32_0 = arith.constant 0 : i32
    return %c0_i32, %arg1 : i32, i32
  }
  func.func @transform_5(%arg0: i32, %arg1: i32) -> (i32, i32) {
    %c0_i32 = arith.constant 0 : i32
    return %arg0, %arg1 : i32, i32
  }
}

module attributes {stable_mosaic.version = 11 : i64} {
  func.func @_mm_kernel(%arg0: i32, %arg1: i32, %arg2: i32, %arg3: memref<16x32xf32, #tpu.memory_space<vmem>>, %arg4: memref<32x32xf32, #tpu.memory_space<vmem>>, %arg5: memref<1x32xf32, #tpu.memory_space<vmem>>, %arg6: memref<16x32xf32, #tpu.memory_space<vmem>>, %arg7: memref<16x32xf32, #tpu.memory_space<vmem>>) attributes {dimension_semantics = [#tpu.dimension_semantics<parallel>, #tpu.dimension_semantics<parallel>, #tpu.dimension_semantics<arbitrary>], iteration_bounds = array<i64: 1, 1, 1>, scalar_prefetch = 0 : i64, scratch_operands = 1 : i64, tpu.core_type = #tpu.core_type<tc>, window_params = [{transform_indices = @transform_0, window_bounds = array<i64: 16, 32>}, {transform_indices = @transform_1, window_bounds = array<i64: 32, 32>}, {transform_indices = @transform_2, window_bounds = array<i64: 1, 32>}, {transform_indices = @transform_3, window_bounds = array<i64: 16, 32>}]} {
    %c0_i32 = arith.constant 0 : i32
    %0 = arith.cmpi eq, %arg2, %c0_i32 : i32
    %1 = arith.extui %0 : i1 to i32
    %c0_i32_0 = arith.constant 0 : i32
    %2 = arith.cmpi ne, %1, %c0_i32_0 : i32
    scf.if %2 {
      %cst_10 = arith.constant 0.000000e+00 : f32
      %12 = vector.broadcast %cst_10 : f32 to vector<16x32xf32>
      %c0_11 = arith.constant 0 : index
      %c0_12 = arith.constant 0 : index
      %13 = vector.load %arg7[%c0_11, %c0_12] : memref<16x32xf32, #tpu.memory_space<vmem>>, vector<16x32xf32>
      tpu.vector_store %arg7[%c0_11, %c0_12], %12 {strides = array<i32>} : memref<16x32xf32, #tpu.memory_space<vmem>>, vector<16x32xf32>,
    } else {
    }
    %c0 = arith.constant 0 : index
    %c0_1 = arith.constant 0 : index
    %3 = vector.load %arg7[%c0, %c0_1] : memref<16x32xf32, #tpu.memory_space<vmem>>, vector<16x32xf32>
    %c0_2 = arith.constant 0 : index
    %c0_3 = arith.constant 0 : index
    %4 = vector.load %arg3[%c0_2, %c0_3] : memref<16x32xf32, #tpu.memory_space<vmem>>, vector<16x32xf32>
    %c0_4 = arith.constant 0 : index
    %c0_5 = arith.constant 0 : index
    %5 = vector.load %arg4[%c0_4, %c0_5] : memref<32x32xf32, #tpu.memory_space<vmem>>, vector<32x32xf32>
    %cst = arith.constant dense<0.000000e+00> : vector<16x32xf32>
    %6 = tpu.matmul %4, %5, %cst {dimension_numbers = #tpu.dot_dimension_numbers<[1], [0], [0], [1], [0, 0, 1, 1], [], []>} : vector<16x32xf32>, vector<32x32xf32>, vector<16x32xf32> -> vector<16x32xf32>
    %7 = arith.addf %3, %6 : vector<16x32xf32>
    %c0_6 = arith.constant 0 : index
    %c0_7 = arith.constant 0 : index
    %8 = vector.load %arg7[%c0_6, %c0_7] : memref<16x32xf32, #tpu.memory_space<vmem>>, vector<16x32xf32>
    tpu.vector_store %arg7[%c0_6, %c0_7], %7 {strides = array<i32>} : memref<16x32xf32, #tpu.memory_space<vmem>>, vector<16x32xf32>,
    %c0_i32_8 = arith.constant 0 : i32
    %9 = arith.cmpi eq, %arg2, %c0_i32_8 : i32
    %10 = arith.extui %9 : i1 to i32
    %c0_i32_9 = arith.constant 0 : i32
    %11 = arith.cmpi ne, %10, %c0_i32_9 : i32
    scf.if %11 {
      %c0_10 = arith.constant 0 : index
      %c0_11 = arith.constant 0 : index
      %12 = vector.load %arg7[%c0_10, %c0_11] : memref<16x32xf32, #tpu.memory_space<vmem>>, vector<16x32xf32>
      %c0_12 = arith.constant 0 : index
      %c0_13 = arith.constant 0 : index
      %13 = vector.load %arg5[%c0_12, %c0_13] : memref<1x32xf32, #tpu.memory_space<vmem>>, vector<1x32xf32>
      %14 = vector.broadcast %13 : vector<1x32xf32> to vector<16x32xf32>
      %15 = arith.addf %12, %14 : vector<16x32xf32>
      %c0_14 = arith.constant 0 : index
      %c0_15 = arith.constant 0 : index
      %16 = vector.load %arg6[%c0_14, %c0_15] : memref<16x32xf32, #tpu.memory_space<vmem>>, vector<16x32xf32>
      tpu.vector_store %arg6[%c0_14, %c0_15], %15 {strides = array<i32>} : memref<16x32xf32, #tpu.memory_space<vmem>>, vector<16x32xf32>,
    } else {
    }
    return
  }
  func.func @transform_0(%arg0: i32, %arg1: i32, %arg2: i32) -> (i32, i32) {
    %c0_i32 = arith.constant 0 : i32
    return %arg0, %arg2 : i32, i32
  }
  func.func @transform_1(%arg0: i32, %arg1: i32, %arg2: i32) -> (i32, i32) {
    %c0_i32 = arith.constant 0 : i32
    return %arg2, %arg1 : i32, i32
  }
  func.func @transform_2(%arg0: i32, %arg1: i32, %arg2: i32) -> (i32, i32) {
    %c0_i32 = arith.constant 0 : i32
    %c0_i32_0 = arith.constant 0 : i32
    return %c0_i32, %arg1 : i32, i32
  }
  func.func @transform_3(%arg0: i32, %arg1: i32, %arg2: i32) -> (i32, i32) {
    %c0_i32 = arith.constant 0 : i32
    return %arg0, %arg1 : i32, i32
  }
}

module attributes {stable_mosaic.version = 11 : i64} {
  func.func @_flash_attn_kernel(%arg0: i32, %arg1: i32, %arg2: i32, %arg3: memref<1x8x8xf32, #tpu.memory_space<vmem>>, %arg4: memref<1x8x8xf32, #tpu.memory_space<vmem>>, %arg5: memref<1x8x8xf32, #tpu.memory_space<vmem>>, %arg6: memref<1x8x8xf32, #tpu.memory_space<vmem>>, %arg7: memref<8x1xf32, #tpu.memory_space<vmem>>, %arg8: memref<8x1xf32, #tpu.memory_space<vmem>>, %arg9: memref<8x8xf32, #tpu.memory_space<vmem>>) attributes {dimension_semantics = [#tpu.dimension_semantics<parallel>, #tpu.dimension_semantics<parallel>, #tpu.dimension_semantics<arbitrary>], iteration_bounds = array<i64: 8, 1, 1>, scalar_prefetch = 0 : i64, scratch_operands = 3 : i64, tpu.core_type = #tpu.core_type<tc>, window_params = [{transform_indices = @transform_0, window_bounds = array<i64: 1, 8, 8>}, {transform_indices = @transform_1, window_bounds = array<i64: 1, 8, 8>}, {transform_indices = @transform_2, window_bounds = array<i64: 1, 8, 8>}, {transform_indices = @transform_3, window_bounds = array<i64: 1, 8, 8>}]} {
    %c0_i32 = arith.constant 0 : i32
    %0 = arith.cmpi eq, %arg2, %c0_i32 : i32
    %1 = arith.extui %0 : i1 to i32
    %c0_i32_0 = arith.constant 0 : i32
    %2 = arith.cmpi ne, %1, %c0_i32_0 : i32
    scf.if %2 {
      %cst_27 = arith.constant 0xFF800000 : f32
      %37 = vector.broadcast %cst_27 : f32 to vector<8x1xf32>
      %c0_28 = arith.constant 0 : index
      %c0_29 = arith.constant 0 : index
      %38 = vector.load %arg7[%c0_28, %c0_29] : memref<8x1xf32, #tpu.memory_space<vmem>>, vector<8x1xf32>
      tpu.vector_store %arg7[%c0_28, %c0_29], %37 {strides = array<i32>} : memref<8x1xf32, #tpu.memory_space<vmem>>, vector<8x1xf32>,
      %cst_30 = arith.constant 0.000000e+00 : f32
      %39 = vector.broadcast %cst_30 : f32 to vector<8x1xf32>
      %c0_31 = arith.constant 0 : index
      %c0_32 = arith.constant 0 : index
      %40 = vector.load %arg8[%c0_31, %c0_32] : memref<8x1xf32, #tpu.memory_space<vmem>>, vector<8x1xf32>
      tpu.vector_store %arg8[%c0_31, %c0_32], %39 {strides = array<i32>} : memref<8x1xf32, #tpu.memory_space<vmem>>, vector<8x1xf32>,
      %cst_33 = arith.constant 0.000000e+00 : f32
      %41 = vector.broadcast %cst_33 : f32 to vector<8x8xf32>
      %c0_34 = arith.constant 0 : index
      %c0_35 = arith.constant 0 : index
      %42 = vector.load %arg9[%c0_34, %c0_35] : memref<8x8xf32, #tpu.memory_space<vmem>>, vector<8x8xf32>
      tpu.vector_store %arg9[%c0_34, %c0_35], %41 {strides = array<i32>} : memref<8x8xf32, #tpu.memory_space<vmem>>, vector<8x8xf32>,
    } else {
    }
    %c0 = arith.constant 0 : index
    %c0_1 = arith.constant 0 : index
    %c0_2 = arith.constant 0 : index
    %3 = vector.load %arg3[%c0, %c0_1, %c0_2] : memref<1x8x8xf32, #tpu.memory_space<vmem>>, vector<1x8x8xf32>
    %4 = vector.shape_cast %3 : vector<1x8x8xf32> to vector<8x8xf32>
    %cst = arith.constant 0.353553385 : f32
    %5 = vector.broadcast %cst : f32 to vector<8x8xf32>
    %6 = arith.mulf %4, %5 : vector<8x8xf32>
    %c0_3 = arith.constant 0 : index
    %c0_4 = arith.constant 0 : index
    %c0_5 = arith.constant 0 : index
    %7 = vector.load %arg4[%c0_3, %c0_4, %c0_5] : memref<1x8x8xf32, #tpu.memory_space<vmem>>, vector<1x8x8xf32>
    %8 = vector.shape_cast %7 : vector<1x8x8xf32> to vector<8x8xf32>
    %c0_6 = arith.constant 0 : index
    %c0_7 = arith.constant 0 : index
    %c0_8 = arith.constant 0 : index
    %9 = vector.load %arg5[%c0_6, %c0_7, %c0_8] : memref<1x8x8xf32, #tpu.memory_space<vmem>>, vector<1x8x8xf32>
    %10 = vector.shape_cast %9 : vector<1x8x8xf32> to vector<8x8xf32>
    %cst_9 = arith.constant dense<0.000000e+00> : vector<8x8xf32>
    %11 = tpu.matmul %6, %8, %cst_9 {dimension_numbers = #tpu.dot_dimension_numbers<[1], [1], [0], [0], [0, 0, 1, 0], [], []>} : vector<8x8xf32>, vector<8x8xf32>, vector<8x8xf32> -> vector<8x8xf32>
    %c0_10 = arith.constant 0 : index
    %c0_11 = arith.constant 0 : index
    %12 = vector.load %arg7[%c0_10, %c0_11] : memref<8x1xf32, #tpu.memory_space<vmem>>, vector<8x1xf32>
    %cst_12 = arith.constant dense<0xFF800000> : vector<8xf32>
    %13 = vector.multi_reduction <maximumf>, %11, %cst_12 [1] : vector<8x8xf32> to vector<8xf32>
    %14 = vector.shape_cast %13 : vector<8xf32> to vector<8x1xf32>
    %15 = arith.maximumf %12, %14 : vector<8x1xf32>
    %16 = arith.subf %12, %15 : vector<8x1xf32>
    %17 = math.exp %16 : vector<8x1xf32>
    %18 = vector.broadcast %15 : vector<8x1xf32> to vector<8x8xf32>
    %19 = arith.subf %11, %18 : vector<8x8xf32>
    %20 = math.exp %19 : vector<8x8xf32>
    %c0_13 = arith.constant 0 : index
    %c0_14 = arith.constant 0 : index
    %21 = vector.load %arg8[%c0_13, %c0_14] : memref<8x1xf32, #tpu.memory_space<vmem>>, vector<8x1xf32>
    %22 = arith.mulf %17, %21 : vector<8x1xf32>
    %cst_15 = arith.constant dense<0.000000e+00> : vector<8xf32>
    %23 = vector.multi_reduction <add>, %20, %cst_15 [1] : vector<8x8xf32> to vector<8xf32>
    %24 = vector.shape_cast %23 : vector<8xf32> to vector<8x1xf32>
    %25 = arith.addf %22, %24 : vector<8x1xf32>
    %c0_16 = arith.constant 0 : index
    %c0_17 = arith.constant 0 : index
    %26 = vector.load %arg8[%c0_16, %c0_17] : memref<8x1xf32, #tpu.memory_space<vmem>>, vector<8x1xf32>
    tpu.vector_store %arg8[%c0_16, %c0_17], %25 {strides = array<i32>} : memref<8x1xf32, #tpu.memory_space<vmem>>, vector<8x1xf32>,
    %c0_18 = arith.constant 0 : index
    %c0_19 = arith.constant 0 : index
    %27 = vector.load %arg9[%c0_18, %c0_19] : memref<8x8xf32, #tpu.memory_space<vmem>>, vector<8x8xf32>
    %28 = vector.broadcast %17 : vector<8x1xf32> to vector<8x8xf32>
    %29 = arith.mulf %28, %27 : vector<8x8xf32>
    %cst_20 = arith.constant dense<0.000000e+00> : vector<8x8xf32>
    %30 = tpu.matmul %20, %10, %cst_20 {dimension_numbers = #tpu.dot_dimension_numbers<[1], [0], [0], [1], [0, 0, 1, 1], [], []>} : vector<8x8xf32>, vector<8x8xf32>, vector<8x8xf32> -> vector<8x8xf32>
    %31 = arith.addf %29, %30 : vector<8x8xf32>
    %c0_21 = arith.constant 0 : index
    %c0_22 = arith.constant 0 : index
    %32 = vector.load %arg9[%c0_21, %c0_22] : memref<8x8xf32, #tpu.memory_space<vmem>>, vector<8x8xf32>
    tpu.vector_store %arg9[%c0_21, %c0_22], %31 {strides = array<i32>} : memref<8x8xf32, #tpu.memory_space<vmem>>, vector<8x8xf32>,
    %c0_23 = arith.constant 0 : index
    %c0_24 = arith.constant 0 : index
    %33 = vector.load %arg7[%c0_23, %c0_24] : memref<8x1xf32, #tpu.memory_space<vmem>>, vector<8x1xf32>
    tpu.vector_store %arg7[%c0_23, %c0_24], %15 {strides = array<i32>} : memref<8x1xf32, #tpu.memory_space<vmem>>, vector<8x1xf32>,
    %c0_i32_25 = arith.constant 0 : i32
    %34 = arith.cmpi eq, %arg2, %c0_i32_25 : i32
    %35 = arith.extui %34 : i1 to i32
    %c0_i32_26 = arith.constant 0 : i32
    %36 = arith.cmpi ne, %35, %c0_i32_26 : i32
    scf.if %36 {
      %c0_27 = arith.constant 0 : index
      %c0_28 = arith.constant 0 : index
      %37 = vector.load %arg8[%c0_27, %c0_28] : memref<8x1xf32, #tpu.memory_space<vmem>>, vector<8x1xf32>
      %38 = tpu.reciprocal %37 {approx = true} : vector<8x1xf32> -> vector<8x1xf32>
      %c0_29 = arith.constant 0 : index
      %c0_30 = arith.constant 0 : index
      %39 = vector.load %arg9[%c0_29, %c0_30] : memref<8x8xf32, #tpu.memory_space<vmem>>, vector<8x8xf32>
      %40 = vector.broadcast %38 : vector<8x1xf32> to vector<8x8xf32>
      %41 = arith.mulf %39, %40 : vector<8x8xf32>
      %c0_31 = arith.constant 0 : index
      %c0_32 = arith.constant 0 : index
      %c0_33 = arith.constant 0 : index
      %42 = vector.load %arg6[%c0_31, %c0_32, %c0_33] : memref<1x8x8xf32, #tpu.memory_space<vmem>>, vector<1x8x8xf32>
      %43 = vector.shape_cast %42 : vector<1x8x8xf32> to vector<8x8xf32>
      %44 = vector.shape_cast %41 : vector<8x8xf32> to vector<1x8x8xf32>
      tpu.vector_store %arg6[%c0_31, %c0_32, %c0_33], %44 {strides = array<i32>} : memref<1x8x8xf32, #tpu.memory_space<vmem>>, vector<1x8x8xf32>,
    } else {
    }
    return
  }
  func.func @transform_0(%arg0: i32, %arg1: i32, %arg2: i32) -> (i32, i32, i32) {
    %c0_i32 = arith.constant 0 : i32
    %c0_i32_0 = arith.constant 0 : i32
    return %arg0, %arg1, %c0_i32 : i32, i32, i32
  }
  func.func @transform_1(%arg0: i32, %arg1: i32, %arg2: i32) -> (i32, i32, i32) {
    %c0_i32 = arith.constant 0 : i32
    %c0_i32_0 = arith.constant 0 : i32
    return %arg0, %arg2, %c0_i32 : i32, i32, i32
  }
  func.func @transform_2(%arg0: i32, %arg1: i32, %arg2: i32) -> (i32, i32, i32) {
    %c0_i32 = arith.constant 0 : i32
    %c0_i32_0 = arith.constant 0 : i32
    return %arg0, %arg2, %c0_i32 : i32, i32, i32
  }
  func.func @transform_3(%arg0: i32, %arg1: i32, %arg2: i32) -> (i32, i32, i32) {
    %c0_i32 = arith.constant 0 : i32
    %c0_i32_0 = arith.constant 0 : i32
    return %arg0, %arg1, %c0_i32 : i32, i32, i32
  }
}

module attributes {stable_mosaic.version = 11 : i64} {
  func.func @_mm_res_kernel(%arg0: i32, %arg1: i32, %arg2: i32, %arg3: memref<16x32xf32, #tpu.memory_space<vmem>>, %arg4: memref<32x32xf32, #tpu.memory_space<vmem>>, %arg5: memref<1x32xf32, #tpu.memory_space<vmem>>, %arg6: memref<16x32xf32, #tpu.memory_space<vmem>>, %arg7: memref<16x32xf32, #tpu.memory_space<vmem>>, %arg8: memref<16x32xf32, #tpu.memory_space<vmem>>) attributes {dimension_semantics = [#tpu.dimension_semantics<parallel>, #tpu.dimension_semantics<parallel>, #tpu.dimension_semantics<arbitrary>], iteration_bounds = array<i64: 1, 1, 1>, scalar_prefetch = 0 : i64, scratch_operands = 1 : i64, tpu.core_type = #tpu.core_type<tc>, window_params = [{transform_indices = @transform_0, window_bounds = array<i64: 16, 32>}, {transform_indices = @transform_1, window_bounds = array<i64: 32, 32>}, {transform_indices = @transform_2, window_bounds = array<i64: 1, 32>}, {transform_indices = @transform_3, window_bounds = array<i64: 16, 32>}, {transform_indices = @transform_4, window_bounds = array<i64: 16, 32>}]} {
    %c0_i32 = arith.constant 0 : i32
    %0 = arith.cmpi eq, %arg2, %c0_i32 : i32
    %1 = arith.extui %0 : i1 to i32
    %c0_i32_0 = arith.constant 0 : i32
    %2 = arith.cmpi ne, %1, %c0_i32_0 : i32
    scf.if %2 {
      %cst_10 = arith.constant 0.000000e+00 : f32
      %12 = vector.broadcast %cst_10 : f32 to vector<16x32xf32>
      %c0_11 = arith.constant 0 : index
      %c0_12 = arith.constant 0 : index
      %13 = vector.load %arg8[%c0_11, %c0_12] : memref<16x32xf32, #tpu.memory_space<vmem>>, vector<16x32xf32>
      tpu.vector_store %arg8[%c0_11, %c0_12], %12 {strides = array<i32>} : memref<16x32xf32, #tpu.memory_space<vmem>>, vector<16x32xf32>,
    } else {
    }
    %c0 = arith.constant 0 : index
    %c0_1 = arith.constant 0 : index
    %3 = vector.load %arg8[%c0, %c0_1] : memref<16x32xf32, #tpu.memory_space<vmem>>, vector<16x32xf32>
    %c0_2 = arith.constant 0 : index
    %c0_3 = arith.constant 0 : index
    %4 = vector.load %arg3[%c0_2, %c0_3] : memref<16x32xf32, #tpu.memory_space<vmem>>, vector<16x32xf32>
    %c0_4 = arith.constant 0 : index
    %c0_5 = arith.constant 0 : index
    %5 = vector.load %arg4[%c0_4, %c0_5] : memref<32x32xf32, #tpu.memory_space<vmem>>, vector<32x32xf32>
    %cst = arith.constant dense<0.000000e+00> : vector<16x32xf32>
    %6 = tpu.matmul %4, %5, %cst {dimension_numbers = #tpu.dot_dimension_numbers<[1], [0], [0], [1], [0, 0, 1, 1], [], []>} : vector<16x32xf32>, vector<32x32xf32>, vector<16x32xf32> -> vector<16x32xf32>
    %7 = arith.addf %3, %6 : vector<16x32xf32>
    %c0_6 = arith.constant 0 : index
    %c0_7 = arith.constant 0 : index
    %8 = vector.load %arg8[%c0_6, %c0_7] : memref<16x32xf32, #tpu.memory_space<vmem>>, vector<16x32xf32>
    tpu.vector_store %arg8[%c0_6, %c0_7], %7 {strides = array<i32>} : memref<16x32xf32, #tpu.memory_space<vmem>>, vector<16x32xf32>,
    %c0_i32_8 = arith.constant 0 : i32
    %9 = arith.cmpi eq, %arg2, %c0_i32_8 : i32
    %10 = arith.extui %9 : i1 to i32
    %c0_i32_9 = arith.constant 0 : i32
    %11 = arith.cmpi ne, %10, %c0_i32_9 : i32
    scf.if %11 {
      %c0_10 = arith.constant 0 : index
      %c0_11 = arith.constant 0 : index
      %12 = vector.load %arg8[%c0_10, %c0_11] : memref<16x32xf32, #tpu.memory_space<vmem>>, vector<16x32xf32>
      %c0_12 = arith.constant 0 : index
      %c0_13 = arith.constant 0 : index
      %13 = vector.load %arg5[%c0_12, %c0_13] : memref<1x32xf32, #tpu.memory_space<vmem>>, vector<1x32xf32>
      %14 = vector.broadcast %13 : vector<1x32xf32> to vector<16x32xf32>
      %15 = arith.addf %12, %14 : vector<16x32xf32>
      %c0_14 = arith.constant 0 : index
      %c0_15 = arith.constant 0 : index
      %16 = vector.load %arg6[%c0_14, %c0_15] : memref<16x32xf32, #tpu.memory_space<vmem>>, vector<16x32xf32>
      %17 = arith.addf %15, %16 : vector<16x32xf32>
      %c0_16 = arith.constant 0 : index
      %c0_17 = arith.constant 0 : index
      %18 = vector.load %arg7[%c0_16, %c0_17] : memref<16x32xf32, #tpu.memory_space<vmem>>, vector<16x32xf32>
      tpu.vector_store %arg7[%c0_16, %c0_17], %17 {strides = array<i32>} : memref<16x32xf32, #tpu.memory_space<vmem>>, vector<16x32xf32>,
    } else {
    }
    return
  }
  func.func @transform_0(%arg0: i32, %arg1: i32, %arg2: i32) -> (i32, i32) {
    %c0_i32 = arith.constant 0 : i32
    return %arg0, %arg2 : i32, i32
  }
  func.func @transform_1(%arg0: i32, %arg1: i32, %arg2: i32) -> (i32, i32) {
    %c0_i32 = arith.constant 0 : i32
    return %arg2, %arg1 : i32, i32
  }
  func.func @transform_2(%arg0: i32, %arg1: i32, %arg2: i32) -> (i32, i32) {
    %c0_i32 = arith.constant 0 : i32
    %c0_i32_0 = arith.constant 0 : i32
    return %c0_i32, %arg1 : i32, i32
  }
  func.func @transform_3(%arg0: i32, %arg1: i32, %arg2: i32) -> (i32, i32) {
    %c0_i32 = arith.constant 0 : i32
    return %arg0, %arg1 : i32, i32
  }
  func.func @transform_4(%arg0: i32, %arg1: i32, %arg2: i32) -> (i32, i32) {
    %c0_i32 = arith.constant 0 : i32
    return %arg0, %arg1 : i32, i32
  }
}

module attributes {stable_mosaic.version = 11 : i64} {
  func.func @_mm_res_kernel(%arg0: i32, %arg1: i32, %arg2: i32, %arg3: memref<16x64xf32, #tpu.memory_space<vmem>>, %arg4: memref<64x32xf32, #tpu.memory_space<vmem>>, %arg5: memref<1x32xf32, #tpu.memory_space<vmem>>, %arg6: memref<16x32xf32, #tpu.memory_space<vmem>>, %arg7: memref<16x32xf32, #tpu.memory_space<vmem>>, %arg8: memref<16x32xf32, #tpu.memory_space<vmem>>) attributes {dimension_semantics = [#tpu.dimension_semantics<parallel>, #tpu.dimension_semantics<parallel>, #tpu.dimension_semantics<arbitrary>], iteration_bounds = array<i64: 1, 1, 1>, scalar_prefetch = 0 : i64, scratch_operands = 1 : i64, tpu.core_type = #tpu.core_type<tc>, window_params = [{transform_indices = @transform_0, window_bounds = array<i64: 16, 64>}, {transform_indices = @transform_1, window_bounds = array<i64: 64, 32>}, {transform_indices = @transform_2, window_bounds = array<i64: 1, 32>}, {transform_indices = @transform_3, window_bounds = array<i64: 16, 32>}, {transform_indices = @transform_4, window_bounds = array<i64: 16, 32>}]} {
    %c0_i32 = arith.constant 0 : i32
    %0 = arith.cmpi eq, %arg2, %c0_i32 : i32
    %1 = arith.extui %0 : i1 to i32
    %c0_i32_0 = arith.constant 0 : i32
    %2 = arith.cmpi ne, %1, %c0_i32_0 : i32
    scf.if %2 {
      %cst_10 = arith.constant 0.000000e+00 : f32
      %12 = vector.broadcast %cst_10 : f32 to vector<16x32xf32>
      %c0_11 = arith.constant 0 : index
      %c0_12 = arith.constant 0 : index
      %13 = vector.load %arg8[%c0_11, %c0_12] : memref<16x32xf32, #tpu.memory_space<vmem>>, vector<16x32xf32>
      tpu.vector_store %arg8[%c0_11, %c0_12], %12 {strides = array<i32>} : memref<16x32xf32, #tpu.memory_space<vmem>>, vector<16x32xf32>,
    } else {
    }
    %c0 = arith.constant 0 : index
    %c0_1 = arith.constant 0 : index
    %3 = vector.load %arg8[%c0, %c0_1] : memref<16x32xf32, #tpu.memory_space<vmem>>, vector<16x32xf32>
    %c0_2 = arith.constant 0 : index
    %c0_3 = arith.constant 0 : index
    %4 = vector.load %arg3[%c0_2, %c0_3] : memref<16x64xf32, #tpu.memory_space<vmem>>, vector<16x64xf32>
    %c0_4 = arith.constant 0 : index
    %c0_5 = arith.constant 0 : index
    %5 = vector.load %arg4[%c0_4, %c0_5] : memref<64x32xf32, #tpu.memory_space<vmem>>, vector<64x32xf32>
    %cst = arith.constant dense<0.000000e+00> : vector<16x32xf32>
    %6 = tpu.matmul %4, %5, %cst {dimension_numbers = #tpu.dot_dimension_numbers<[1], [0], [0], [1], [0, 0, 1, 1], [], []>} : vector<16x64xf32>, vector<64x32xf32>, vector<16x32xf32> -> vector<16x32xf32>
    %7 = arith.addf %3, %6 : vector<16x32xf32>
    %c0_6 = arith.constant 0 : index
    %c0_7 = arith.constant 0 : index
    %8 = vector.load %arg8[%c0_6, %c0_7] : memref<16x32xf32, #tpu.memory_space<vmem>>, vector<16x32xf32>
    tpu.vector_store %arg8[%c0_6, %c0_7], %7 {strides = array<i32>} : memref<16x32xf32, #tpu.memory_space<vmem>>, vector<16x32xf32>,
    %c0_i32_8 = arith.constant 0 : i32
    %9 = arith.cmpi eq, %arg2, %c0_i32_8 : i32
    %10 = arith.extui %9 : i1 to i32
    %c0_i32_9 = arith.constant 0 : i32
    %11 = arith.cmpi ne, %10, %c0_i32_9 : i32
    scf.if %11 {
      %c0_10 = arith.constant 0 : index
      %c0_11 = arith.constant 0 : index
      %12 = vector.load %arg8[%c0_10, %c0_11] : memref<16x32xf32, #tpu.memory_space<vmem>>, vector<16x32xf32>
      %c0_12 = arith.constant 0 : index
      %c0_13 = arith.constant 0 : index
      %13 = vector.load %arg5[%c0_12, %c0_13] : memref<1x32xf32, #tpu.memory_space<vmem>>, vector<1x32xf32>
      %14 = vector.broadcast %13 : vector<1x32xf32> to vector<16x32xf32>
      %15 = arith.addf %12, %14 : vector<16x32xf32>
      %c0_14 = arith.constant 0 : index
      %c0_15 = arith.constant 0 : index
      %16 = vector.load %arg6[%c0_14, %c0_15] : memref<16x32xf32, #tpu.memory_space<vmem>>, vector<16x32xf32>
      %17 = arith.addf %15, %16 : vector<16x32xf32>
      %c0_16 = arith.constant 0 : index
      %c0_17 = arith.constant 0 : index
      %18 = vector.load %arg7[%c0_16, %c0_17] : memref<16x32xf32, #tpu.memory_space<vmem>>, vector<16x32xf32>
      tpu.vector_store %arg7[%c0_16, %c0_17], %17 {strides = array<i32>} : memref<16x32xf32, #tpu.memory_space<vmem>>, vector<16x32xf32>,
    } else {
    }
    return
  }
  func.func @transform_0(%arg0: i32, %arg1: i32, %arg2: i32) -> (i32, i32) {
    %c0_i32 = arith.constant 0 : i32
    return %arg0, %arg2 : i32, i32
  }
  func.func @transform_1(%arg0: i32, %arg1: i32, %arg2: i32) -> (i32, i32) {
    %c0_i32 = arith.constant 0 : i32
    return %arg2, %arg1 : i32, i32
  }
  func.func @transform_2(%arg0: i32, %arg1: i32, %arg2: i32) -> (i32, i32) {
    %c0_i32 = arith.constant 0 : i32
    %c0_i32_0 = arith.constant 0 : i32
    return %c0_i32, %arg1 : i32, i32
  }
  func.func @transform_3(%arg0: i32, %arg1: i32, %arg2: i32) -> (i32, i32) {
    %c0_i32 = arith.constant 0 : i32
    return %arg0, %arg1 : i32, i32
  }
  func.func @transform_4(%arg0: i32, %arg1: i32, %arg2: i32) -> (i32, i32) {
    %c0_i32 = arith.constant 0 : i32
    return %arg0, %arg1 : i32, i32
  }
}

module attributes {stable_mosaic.version = 11 : i64} {
  func.func @_ln_mm_kernel(%arg0: i32, %arg1: i32, %arg2: memref<16x32xf32, #tpu.memory_space<vmem>>, %arg3: memref<1x32xf32, #tpu.memory_space<vmem>>, %arg4: memref<1x32xf32, #tpu.memory_space<vmem>>, %arg5: memref<32x64xf32, #tpu.memory_space<vmem>>, %arg6: memref<1x64xf32, #tpu.memory_space<vmem>>, %arg7: memref<16x64xf32, #tpu.memory_space<vmem>>) attributes {dimension_semantics = [#tpu.dimension_semantics<parallel>, #tpu.dimension_semantics<parallel>], iteration_bounds = array<i64: 1, 1>, scalar_prefetch = 0 : i64, scratch_operands = 0 : i64, tpu.core_type = #tpu.core_type<tc>, window_params = [{transform_indices = @transform_0, window_bounds = array<i64: 16, 32>}, {pipeline_mode = #tpu.pipeline_mode<synchronous>, transform_indices = @transform_1, window_bounds = array<i64: 1, 32>}, {pipeline_mode = #tpu.pipeline_mode<synchronous>, transform_indices = @transform_2, window_bounds = array<i64: 1, 32>}, {transform_indices = @transform_3, window_bounds = array<i64: 32, 64>}, {transform_indices = @transform_4, window_bounds = array<i64: 1, 64>}, {transform_indices = @transform_5, window_bounds = array<i64: 16, 64>}]} {
    %c0 = arith.constant 0 : index
    %c0_0 = arith.constant 0 : index
    %0 = vector.load %arg2[%c0, %c0_0] : memref<16x32xf32, #tpu.memory_space<vmem>>, vector<16x32xf32>
    %c0_1 = arith.constant 0 : index
    %c0_2 = arith.constant 0 : index
    %1 = vector.load %arg3[%c0_1, %c0_2] : memref<1x32xf32, #tpu.memory_space<vmem>>, vector<1x32xf32>
    %c0_3 = arith.constant 0 : index
    %c0_4 = arith.constant 0 : index
    %2 = vector.load %arg4[%c0_3, %c0_4] : memref<1x32xf32, #tpu.memory_space<vmem>>, vector<1x32xf32>
    %cst = arith.constant dense<0.000000e+00> : vector<16xf32>
    %3 = vector.multi_reduction <add>, %0, %cst [1] : vector<16x32xf32> to vector<16xf32>
    %4 = vector.shape_cast %3 : vector<16xf32> to vector<16x1xf32>
    %cst_5 = arith.constant 3.200000e+01 : f32
    %5 = vector.broadcast %cst_5 : f32 to vector<16x1xf32>
    %6 = arith.divf %4, %5 : vector<16x1xf32>
    %7 = vector.broadcast %6 : vector<16x1xf32> to vector<16x32xf32>
    %8 = arith.subf %0, %7 : vector<16x32xf32>
    %9 = arith.mulf %8, %8 : vector<16x32xf32>
    %cst_6 = arith.constant dense<0.000000e+00> : vector<16xf32>
    %10 = vector.multi_reduction <add>, %9, %cst_6 [1] : vector<16x32xf32> to vector<16xf32>
    %11 = vector.shape_cast %10 : vector<16xf32> to vector<16x1xf32>
    %cst_7 = arith.constant 3.200000e+01 : f32
    %12 = vector.broadcast %cst_7 : f32 to vector<16x1xf32>
    %13 = arith.divf %11, %12 : vector<16x1xf32>
    %cst_8 = arith.constant 9.99999974E-6 : f32
    %14 = vector.broadcast %cst_8 : f32 to vector<16x1xf32>
    %15 = arith.addf %13, %14 : vector<16x1xf32>
    %16 = math.rsqrt %15 : vector<16x1xf32>
    %17 = vector.broadcast %16 : vector<16x1xf32> to vector<16x32xf32>
    %18 = arith.mulf %8, %17 : vector<16x32xf32>
    %19 = vector.broadcast %1 : vector<1x32xf32> to vector<16x32xf32>
    %20 = arith.mulf %18, %19 : vector<16x32xf32>
    %21 = vector.broadcast %2 : vector<1x32xf32> to vector<16x32xf32>
    %22 = arith.addf %20, %21 : vector<16x32xf32>
    %c0_9 = arith.constant 0 : index
    %c0_10 = arith.constant 0 : index
    %23 = vector.load %arg5[%c0_9, %c0_10] : memref<32x64xf32, #tpu.memory_space<vmem>>, vector<32x64xf32>
    %cst_11 = arith.constant dense<0.000000e+00> : vector<16x64xf32>
    %24 = tpu.matmul %22, %23, %cst_11 {dimension_numbers = #tpu.dot_dimension_numbers<[1], [0], [0], [1], [0, 0, 1, 1], [], []>} : vector<16x32xf32>, vector<32x64xf32>, vector<16x64xf32> -> vector<16x64xf32>
    %c0_12 = arith.constant 0 : index
    %c0_13 = arith.constant 0 : index
    %25 = vector.load %arg6[%c0_12, %c0_13] : memref<1x64xf32, #tpu.memory_space<vmem>>, vector<1x64xf32>
    %26 = vector.broadcast %25 : vector<1x64xf32> to vector<16x64xf32>
    %27 = arith.addf %24, %26 : vector<16x64xf32>
    %cst_14 = arith.constant 0.707106769 : f32
    %28 = vector.broadcast %cst_14 : f32 to vector<16x64xf32>
    %29 = arith.mulf %27, %28 : vector<16x64xf32>
    %30 = math.absf %29 : vector<16x64xf32>
    %cst_15 = arith.constant 0.327591091 : f32
    %31 = vector.broadcast %cst_15 : f32 to vector<16x64xf32>
    %32 = arith.mulf %31, %30 : vector<16x64xf32>
    %cst_16 = arith.constant 1.000000e+00 : f32
    %33 = vector.broadcast %cst_16 : f32 to vector<16x64xf32>
    %34 = arith.addf %33, %32 : vector<16x64xf32>
    %cst_17 = arith.constant 1.000000e+00 : f32
    %35 = vector.broadcast %cst_17 : f32 to vector<16x64xf32>
    %36 = arith.divf %35, %34 : vector<16x64xf32>
    %cst_18 = arith.constant 1.06140542 : f32
    %37 = vector.broadcast %cst_18 : f32 to vector<16x64xf32>
    %38 = arith.mulf %36, %37 : vector<16x64xf32>
    %cst_19 = arith.constant -1.45315206 : f32
    %39 = vector.broadcast %cst_19 : f32 to vector<16x64xf32>
    %40 = arith.addf %39, %38 : vector<16x64xf32>
    %41 = arith.mulf %36, %40 : vector<16x64xf32>
    %cst_20 = arith.constant 1.42141378 : f32
    %42 = vector.broadcast %cst_20 : f32 to vector<16x64xf32>
    %43 = arith.addf %42, %41 : vector<16x64xf32>
    %44 = arith.mulf %36, %43 : vector<16x64xf32>
    %cst_21 = arith.constant -0.284496725 : f32
    %45 = vector.broadcast %cst_21 : f32 to vector<16x64xf32>
    %46 = arith.addf %45, %44 : vector<16x64xf32>
    %47 = arith.mulf %36, %46 : vector<16x64xf32>
    %cst_22 = arith.constant 0.254829586 : f32
    %48 = vector.broadcast %cst_22 : f32 to vector<16x64xf32>
    %49 = arith.addf %48, %47 : vector<16x64xf32>
    %50 = arith.mulf %36, %49 : vector<16x64xf32>
    %cst_23 = arith.constant 0.000000e+00 : f32
    %51 = vector.broadcast %cst_23 : f32 to vector<16x64xf32>
    %52 = arith.subf %51, %30 : vector<16x64xf32>
    %53 = arith.mulf %52, %30 : vector<16x64xf32>
    %54 = math.exp %53 : vector<16x64xf32>
    %55 = arith.mulf %50, %54 : vector<16x64xf32>
    %cst_24 = arith.constant 1.000000e+00 : f32
    %56 = vector.broadcast %cst_24 : f32 to vector<16x64xf32>
    %57 = arith.subf %56, %55 : vector<16x64xf32>
    %cst_25 = arith.constant 0.000000e+00 : f32
    %58 = vector.broadcast %cst_25 : f32 to vector<16x64xf32>
    %59 = arith.cmpf oge, %29, %58 : vector<16x64xf32>
    %cst_26 = arith.constant 0.000000e+00 : f32
    %60 = vector.broadcast %cst_26 : f32 to vector<16x64xf32>
    %61 = arith.subf %60, %57 : vector<16x64xf32>
    %62 = arith.select %59, %57, %61 : vector<16x64xi1>, vector<16x64xf32>
    %cst_27 = arith.constant 5.000000e-01 : f32
    %63 = vector.broadcast %cst_27 : f32 to vector<16x64xf32>
    %64 = arith.mulf %63, %27 : vector<16x64xf32>
    %cst_28 = arith.constant 1.000000e+00 : f32
    %65 = vector.broadcast %cst_28 : f32 to vector<16x64xf32>
    %66 = arith.addf %65, %62 : vector<16x64xf32>
    %67 = arith.mulf %64, %66 : vector<16x64xf32>
    %c0_29 = arith.constant 0 : index
    %c0_30 = arith.constant 0 : index
    %68 = vector.load %arg7[%c0_29, %c0_30] : memref<16x64xf32, #tpu.memory_space<vmem>>, vector<16x64xf32>
    tpu.vector_store %arg7[%c0_29, %c0_30], %67 {strides = array<i32>} : memref<16x64xf32, #tpu.memory_space<vmem>>, vector<16x64xf32>,
    return
  }
  func.func @transform_0(%arg0: i32, %arg1: i32) -> (i32, i32) {
    %c0_i32 = arith.constant 0 : i32
    %c0_i32_0 = arith.constant 0 : i32
    return %arg0, %c0_i32 : i32, i32
  }
  func.func @transform_1(%arg0: i32, %arg1: i32) -> (i32, i32) {
    %c0_i32 = arith.constant 0 : i32
    %c0_i32_0 = arith.constant 0 : i32
    %c0_i32_1 = arith.constant 0 : i32
    return %c0_i32, %c0_i32_0 : i32, i32
  }
  func.func @transform_2(%arg0: i32, %arg1: i32) -> (i32, i32) {
    %c0_i32 = arith.constant 0 : i32
    %c0_i32_0 = arith.constant 0 : i32
    %c0_i32_1 = arith.constant 0 : i32
    return %c0_i32, %c0_i32_0 : i32, i32
  }
  func.func @transform_3(%arg0: i32, %arg1: i32) -> (i32, i32) {
    %c0_i32 = arith.constant 0 : i32
    %c0_i32_0 = arith.constant 0 : i32
    return %c0_i32, %arg1 : i32, i32
  }
  func.func @transform_4(%arg0: i32, %arg1: i32) -> (i32, i32) {
    %c0_i32 = arith.constant 0 : i32
    %c0_i32_0 = arith.constant 0 : i32
    return %c0_i32, %arg1 : i32, i32
  }
  func.func @transform_5(%arg0: i32, %arg1: i32) -> (i32, i32) {
    %c0_i32 = arith.constant 0 : i32
    return %arg0, %arg1 : i32, i32
  }
}

module attributes {stable_mosaic.version = 11 : i64} {
  func.func @_ln_mm_kernel(%arg0: i32, %arg1: i32, %arg2: memref<16x32xf32, #tpu.memory_space<vmem>>, %arg3: memref<1x32xf32, #tpu.memory_space<vmem>>, %arg4: memref<1x32xf32, #tpu.memory_space<vmem>>, %arg5: memref<32x32xf32, #tpu.memory_space<vmem>>, %arg6: memref<1x32xf32, #tpu.memory_space<vmem>>, %arg7: memref<16x32xf32, #tpu.memory_space<vmem>>) attributes {dimension_semantics = [#tpu.dimension_semantics<parallel>, #tpu.dimension_semantics<parallel>], iteration_bounds = array<i64: 1, 1>, scalar_prefetch = 0 : i64, scratch_operands = 0 : i64, tpu.core_type = #tpu.core_type<tc>, window_params = [{transform_indices = @transform_0, window_bounds = array<i64: 16, 32>}, {pipeline_mode = #tpu.pipeline_mode<synchronous>, transform_indices = @transform_1, window_bounds = array<i64: 1, 32>}, {pipeline_mode = #tpu.pipeline_mode<synchronous>, transform_indices = @transform_2, window_bounds = array<i64: 1, 32>}, {transform_indices = @transform_3, window_bounds = array<i64: 32, 32>}, {transform_indices = @transform_4, window_bounds = array<i64: 1, 32>}, {transform_indices = @transform_5, window_bounds = array<i64: 16, 32>}]} {
    %c0 = arith.constant 0 : index
    %c0_0 = arith.constant 0 : index
    %0 = vector.load %arg2[%c0, %c0_0] : memref<16x32xf32, #tpu.memory_space<vmem>>, vector<16x32xf32>
    %c0_1 = arith.constant 0 : index
    %c0_2 = arith.constant 0 : index
    %1 = vector.load %arg3[%c0_1, %c0_2] : memref<1x32xf32, #tpu.memory_space<vmem>>, vector<1x32xf32>
    %c0_3 = arith.constant 0 : index
    %c0_4 = arith.constant 0 : index
    %2 = vector.load %arg4[%c0_3, %c0_4] : memref<1x32xf32, #tpu.memory_space<vmem>>, vector<1x32xf32>
    %cst = arith.constant dense<0.000000e+00> : vector<16xf32>
    %3 = vector.multi_reduction <add>, %0, %cst [1] : vector<16x32xf32> to vector<16xf32>
    %4 = vector.shape_cast %3 : vector<16xf32> to vector<16x1xf32>
    %cst_5 = arith.constant 3.200000e+01 : f32
    %5 = vector.broadcast %cst_5 : f32 to vector<16x1xf32>
    %6 = arith.divf %4, %5 : vector<16x1xf32>
    %7 = vector.broadcast %6 : vector<16x1xf32> to vector<16x32xf32>
    %8 = arith.subf %0, %7 : vector<16x32xf32>
    %9 = arith.mulf %8, %8 : vector<16x32xf32>
    %cst_6 = arith.constant dense<0.000000e+00> : vector<16xf32>
    %10 = vector.multi_reduction <add>, %9, %cst_6 [1] : vector<16x32xf32> to vector<16xf32>
    %11 = vector.shape_cast %10 : vector<16xf32> to vector<16x1xf32>
    %cst_7 = arith.constant 3.200000e+01 : f32
    %12 = vector.broadcast %cst_7 : f32 to vector<16x1xf32>
    %13 = arith.divf %11, %12 : vector<16x1xf32>
    %cst_8 = arith.constant 9.99999974E-6 : f32
    %14 = vector.broadcast %cst_8 : f32 to vector<16x1xf32>
    %15 = arith.addf %13, %14 : vector<16x1xf32>
    %16 = math.rsqrt %15 : vector<16x1xf32>
    %17 = vector.broadcast %16 : vector<16x1xf32> to vector<16x32xf32>
    %18 = arith.mulf %8, %17 : vector<16x32xf32>
    %19 = vector.broadcast %1 : vector<1x32xf32> to vector<16x32xf32>
    %20 = arith.mulf %18, %19 : vector<16x32xf32>
    %21 = vector.broadcast %2 : vector<1x32xf32> to vector<16x32xf32>
    %22 = arith.addf %20, %21 : vector<16x32xf32>
    %c0_9 = arith.constant 0 : index
    %c0_10 = arith.constant 0 : index
    %23 = vector.load %arg5[%c0_9, %c0_10] : memref<32x32xf32, #tpu.memory_space<vmem>>, vector<32x32xf32>
    %cst_11 = arith.constant dense<0.000000e+00> : vector<16x32xf32>
    %24 = tpu.matmul %22, %23, %cst_11 {dimension_numbers = #tpu.dot_dimension_numbers<[1], [0], [0], [1], [0, 0, 1, 1], [], []>} : vector<16x32xf32>, vector<32x32xf32>, vector<16x32xf32> -> vector<16x32xf32>
    %c0_12 = arith.constant 0 : index
    %c0_13 = arith.constant 0 : index
    %25 = vector.load %arg6[%c0_12, %c0_13] : memref<1x32xf32, #tpu.memory_space<vmem>>, vector<1x32xf32>
    %26 = vector.broadcast %25 : vector<1x32xf32> to vector<16x32xf32>
    %27 = arith.addf %24, %26 : vector<16x32xf32>
    %c0_14 = arith.constant 0 : index
    %c0_15 = arith.constant 0 : index
    %28 = vector.load %arg7[%c0_14, %c0_15] : memref<16x32xf32, #tpu.memory_space<vmem>>, vector<16x32xf32>
    tpu.vector_store %arg7[%c0_14, %c0_15], %27 {strides = array<i32>} : memref<16x32xf32, #tpu.memory_space<vmem>>, vector<16x32xf32>,
    return
  }
  func.func @transform_0(%arg0: i32, %arg1: i32) -> (i32, i32) {
    %c0_i32 = arith.constant 0 : i32
    %c0_i32_0 = arith.constant 0 : i32
    return %arg0, %c0_i32 : i32, i32
  }
  func.func @transform_1(%arg0: i32, %arg1: i32) -> (i32, i32) {
    %c0_i32 = arith.constant 0 : i32
    %c0_i32_0 = arith.constant 0 : i32
    %c0_i32_1 = arith.constant 0 : i32
    return %c0_i32, %c0_i32_0 : i32, i32
  }
  func.func @transform_2(%arg0: i32, %arg1: i32) -> (i32, i32) {
    %c0_i32 = arith.constant 0 : i32
    %c0_i32_0 = arith.constant 0 : i32
    %c0_i32_1 = arith.constant 0 : i32
    return %c0_i32, %c0_i32_0 : i32, i32
  }
  func.func @transform_3(%arg0: i32, %arg1: i32) -> (i32, i32) {
    %c0_i32 = arith.constant 0 : i32
    %c0_i32_0 = arith.constant 0 : i32
    return %c0_i32, %arg1 : i32, i32
  }
  func.func @transform_4(%arg0: i32, %arg1: i32) -> (i32, i32) {
    %c0_i32 = arith.constant 0 : i32
    %c0_i32_0 = arith.constant 0 : i32
    return %c0_i32, %arg1 : i32, i32
  }
  func.func @transform_5(%arg0: i32, %arg1: i32) -> (i32, i32) {
    %c0_i32 = arith.constant 0 : i32
    return %arg0, %arg1 : i32, i32
  }
}

</mosaic_0001>

<bundles_post_ra>
// kernel: vit_predictor_forward.13
= control target key start
LH: loop header
LB: loop body
LE: loop exit
PB: predicated region body
PF: predicated region fallthrough
CT: control target
= control target key end

     0   :  { %vm24_vm0 = vcmask 261120   ;;  %vm160_vm1 = vcmask 785408   ;;  %s262_s0 = inlined_call_operand.vmem [shape: f32[16,32], index: 0, kind: input, shape index: {}]   ;;  %s263_s3 = inlined_call_operand.vmem [shape: f32[32,96], index: 3, kind: input, shape index: {}]   ;;  %s264_s1 = inlined_call_operand.vmem [shape: f32[1,32], index: 1, kind: input, shape index: {}]   ;;  %s265_s2 = inlined_call_operand.vmem [shape: f32[1,32], index: 2, kind: input, shape index: {}]   ;;  %s266_s4 = inlined_call_operand.vmem [shape: f32[1,96], index: 4, kind: input, shape index: {}]   ;;  %s267_s5 = inlined_call_operand.vmem [shape: f32[16,96], index: 5, kind: output, shape index: {}]  }
   0x1   :  { %v20_v0 = vld [vmem:[%s262_s0] sm:$0xff]  ;;  %v21_v1 = vld [vmem:[%s262_s0 + $0x8] sm:$0xff]  ;;  %v71_v14 = vld [vmem:[%s263_s3 + $0x18] sm:$0xff] }
   0x2   :  { %v25_v2 = vsel %vm24_vm0, %v20_v0, 0.0  ;;  %v28_v3 = vsel %vm24_vm0, %v21_v1, 0.0  ;;  %v70_v15 = vld [vmem:[%s263_s3 + $0x10] sm:$0xff]  ;;  %178 = vmatprep.subr.mxu0 %v71_v14  ;;  %v69_v16 = vld [vmem:[%s263_s3 + $0x8] sm:$0xff]  ;;  %v68_v17 = vld [vmem:[%s263_s3] sm:$0xff] }
   0x3   :  { %26 = vadd.xlane.f32.xlu0 %v25_v2  ;;  %179 = vmatpush3.msra.mxu0 %v71_v14  ;;  %v167_v25 = vld [vmem:[%s264_s1] ss:$0 sm:$0xff] }
   0x4   :  { %180 = vmatprep.subr.mxu0 %v70_v15  ;;  %v168_v27 = vld [vmem:[%s265_s2] ss:$0 sm:$0xff] }
   0x5   :  { %181 = vmatpush3.msra.mxu0 %v70_v15  ;;  %v169_v34 = vld [vmem:[%s266_s4] ss:$0 sm:$0xff] }
   0x6   :  { %182 = vmatprep.subr.mxu0 %v69_v16 }
   0x7   :  { %29 = vadd.xlane.f32.xlu0 %v28_v3  ;;  %183 = vmatpush3.msra.mxu0 %v69_v16 }
   0x8   :  { %184 = vmatprep.subr.mxu0 %v68_v17 }
   0x9   :  { %185 = vmatpush3.msra.mxu0 %v68_v17 }
  0x8c   :  { %v27_v4 = vpop.xlane.xlu0 %26 }
  0x8d   :  { %v32_v5 = vmul.f32 0.03125, %v27_v4 }
  0x8f   :  { %v34_v6 = vsub.f32 %v20_v0, %v32_v5 }
  0x90   :  { %v30_v7 = vpop.xlane.xlu0 %29 }
  0x91   :  { %v33_v8 = vmul.f32 0.03125, %v30_v7  ;;  %v36_v9 = vmul.f32 %v34_v6, %v34_v6 }
  0x93   :  { %v35_v10 = vsub.f32 %v21_v1, %v33_v8  ;;  %v38_v11 = vsel %vm24_vm0, %v36_v9, 0.0 }
  0x94   :  { %39 = vadd.xlane.f32.xlu1 %v38_v11 }
  0x95   :  { %v37_v12 = vmul.f32 %v35_v10, %v35_v10 }
  0x97   :  { %v41_v13 = vsel %vm24_vm0, %v37_v12, 0.0 }
  0x98   :  { %42 = vadd.xlane.f32.xlu1 %v41_v13 }
 0x11d   :  { %v40_v18 = vpop.xlane.xlu1 %39 }
 0x11e   :  { %v44_v19 = vmul.f32 0.03125, %v40_v18 }
 0x120   :  { %v46_v20 = vadd.f32 1e-05, %v44_v19 }
 0x121   :  { %v43_v21 = vpop.xlane.xlu1 %42 }
 0x122   :  { %189 = vrsqrt.f32 %v46_v20  ;;  %v45_v22 = vmul.f32 0.03125, %v43_v21 }
 0x124   :  { %v47_v23 = vadd.f32 1e-05, %v45_v22 }
 0x126   :  { %191 = vrsqrt.f32 %v47_v23 }
 0x12f   :  { %v190_v24 = vpop.eup %189 }
 0x130   :  { %v50_v26 = vmul.f32 %v190_v24, %v34_v6 }
 0x132   :  { %v58_v28 = vmul.f32 %v167_v25, %v50_v26 }
 0x133   :  { %v192_v29 = vpop.eup %191 }
 0x134   :  { %v51_v30 = vmul.f32 %v192_v29, %v35_v10  ;;  %v66_v31 = vadd.f32 %v168_v27, %v58_v28 }
 0x136   :  { %v59_v32 = vmul.f32 %v167_v25, %v51_v30  ;;  %186 = vmatprep.mubr.msk.f32.mxu0 %vm24_vm0, %v66_v31 }
 0x138   :  { %v67_v33 = vadd.f32 %v168_v27, %v59_v32 }
 0x13a   :  { %187 = vmatmul.mubr.msk.f32.vlgmr.msra.gmra.mxu0 %vm24_vm0, %v67_v33 }
 0x1fa   :  { %v188_v35 = vpop.f32.mrf.mxu0 }
 0x1fb   :  { %v157_v36 = vadd.f32 %v188_v35, %v169_v34 }
 0x1fc   :  { %v151_v37 = vpop.f32.mrf.mxu0 }
 0x1fd   :  { %162 = vst.msk [vmem:[%s267_s5 + $0x8] sm:$0xff] %vm160_vm1, %v157_v36  ;;  %v152_v38 = vadd.f32 %v169_v34, %v151_v37 }
 0x1ff   :  { %161 = vst.msk [vmem:[%s267_s5] sm:$0xff] %vm160_vm1, %v152_v38 }

// kernel: vit_predictor_forward.12
= control target key start
LH: loop header
LB: loop body
LE: loop exit
PB: predicated region body
PF: predicated region fallthrough
CT: control target
= control target key end

     0   :  { %8 = vsyncpa [#allocation4], 0  ;;  %s282_s0 = inlined_call_operand.hbm [shape: f32[16,32], index: 0, kind: input, shape index: {}]   ;;  %s283_s1 = inlined_call_operand.hbm [shape: f32[32,32], index: 1, kind: input, shape index: {}]   ;;  %s284_s2 = inlined_call_operand.vmem [shape: f32[1,32], index: 2, kind: input, shape index: {}]   ;;  %s285_s3 = inlined_call_operand.vmem [shape: f32[16,32], index: 3, kind: output, shape index: {}]  }
   0x1   :  { %9 = vsyncpa [#allocation6], 0  ;;  %s234_s12 = smov [#allocation3]  }
   0x2   :  { %s15_s13 = sshll.u32 %s234_s12, 4  ;;  %s16_s13 = int_to_ptr.vmem [resolvable:$true] %s15_s13 }
   0x3   :  { %s198_s14 = scalar_lea.vmem %s16_s13, 256  ;;  %p203_p1 = scmp.lt.s32.totalorder %s16_s13, %s16_s13 }
   0x4   :  { %p199_p0 = scmp.ne.s32.totalorder %s16_s13, %s198_s14  ;;  %p204_p2 = scmp.lt.s32.totalorder %s198_s14, %s198_s14 }
   0x6   :  { %p205_p3 = por %p204_p2, %p203_p1 }
   0x8   :  { %p206_p4 = pnand %p205_p3, %p199_p0 }
   0xa   :  { %209 = shalt.err (!%p206_p4)
}
   0xb   :  { %s235_s15 = smov 128   ;;  %s236_s16 = smov 8  }
   0xc   :  { %21 = dma.hbm_to_vmem [thread:$0]  %s282_s0, 256, %s16_s13, [#allocation4], %s235_s15, %s235_s15, %s236_s16  }
   0xd   :  { %s237_s19 = smov [#allocation5]  }
   0xe   :  { %s27_s20 = sshll.u32 %s237_s19, 4  ;;  %s28_s20 = int_to_ptr.vmem [resolvable:$true] %s27_s20 }
   0xf   :  { %s218_s21 = scalar_lea.vmem %s28_s20, 512  ;;  %p223_p6 = scmp.lt.s32.totalorder %s28_s20, %s28_s20 }
  0x10   :  { %p219_p5 = scmp.ne.s32.totalorder %s28_s20, %s218_s21  ;;  %p224_p7 = scmp.lt.s32.totalorder %s218_s21, %s218_s21 }
  0x12   :  { %p225_p8 = por %p224_p7, %p223_p6 }
  0x14   :  { %p226_p9 = pnand %p225_p8, %p219_p5 }
  0x16   :  { %229 = shalt.err (!%p226_p9)
}
  0x17   :  { %33 = dma.hbm_to_vmem [thread:$0]  %s283_s1, 512, %s28_s20, [#allocation6], %s235_s15, %s235_s15, %s236_s16  }
  0x18   :  { %230 = dma.done.wait [#allocation4], 256  }
  0x19   :  { %231 = vsyncadd [#allocation4], 4294967040 }
  0x1a   :  { %232 = dma.done.wait [#allocation6], 512  }
  0x1b   :  { %233 = vsyncadd [#allocation6], 4294966784  ;;  %vm46_vm0 = vcmask 261120   ;;  %v238_v0 = vmov 0.0   ;;  %v56_v1 = vld [vmem:[#allocation5 + $0x18] sm:$0xff]  ;;  %v55_v2 = vld [vmem:[#allocation5 + $0x10] sm:$0xff] }
  0x1c   :  { %48 = vst.msk [vmem:[#allocation2 + $0x8] sm:$0xff] %vm46_vm0, %v238_v0  ;;  %47 = vst.msk [vmem:[#allocation2] sm:$0xff] %vm46_vm0, %v238_v0  ;;  %174 = vmatprep.subr.mxu0 %v56_v1  ;;  %v51_v3 = vld [vmem:[#allocation3] sm:$0xff]  ;;  %v54_v4 = vld [vmem:[#allocation5 + $0x8] sm:$0xff] }
  0x1d   :  { %175 = vmatpush3.msra.mxu0 %v56_v1  ;;  %182 = vmatprep.mubr.msk.f32.mxu0 %vm46_vm0, %v51_v3  ;;  %v53_v5 = vld [vmem:[#allocation5] sm:$0xff]  ;;  %v52_v6 = vld [vmem:[#allocation3 + $0x8] sm:$0xff] }
  0x1e   :  { %176 = vmatprep.subr.mxu0 %v55_v2  ;;  %v167_v13 = vld [vmem:[%s284_s2] ss:$0 sm:$0xff] }
  0x1f   :  { %177 = vmatpush3.msra.mxu0 %v55_v2 }
  0x20   :  { %178 = vmatprep.subr.mxu0 %v54_v4 }
  0x21   :  { %179 = vmatpush3.msra.mxu0 %v54_v4 }
  0x22   :  { %180 = vmatprep.subr.mxu0 %v53_v5 }
  0x23   :  { %181 = vmatpush3.msra.mxu0 %v53_v5  ;;  %v50_v7 = vld [vmem:[#allocation2 + $0x8] sm:$0xff]  ;;  %v49_v9 = vld [vmem:[#allocation2] sm:$0xff] }
  0x24   :  { %183 = vmatmul.mubr.msk.f32.vlgmr.msra.gmra.mxu0 %vm46_vm0, %v52_v6 }
  0xe4   :  { %v184_v8 = vpop.f32.mrf.mxu0 }
  0xe5   :  { %v140_v10 = vadd.f32 %v184_v8, %v50_v7 }
  0xe6   :  { %v130_v11 = vpop.f32.mrf.mxu0 }
  0xe7   :  { %142 = vst.msk [vmem:[#allocation2 + $0x8] sm:$0xff] %vm46_vm0, %v140_v10  ;;  %v139_v12 = vadd.f32 %v130_v11, %v49_v9 }
  0xe9   :  { %141 = vst.msk [vmem:[#allocation2] sm:$0xff] %vm46_vm0, %v139_v12 }
  0xee   :  { %v147_v14 = vld [vmem:[#allocation2 + $0x8] sm:$0xff] }
  0xef   :  { %v156_v15 = vadd.f32 %v167_v13, %v147_v14 }
  0xf0   :  { %v146_v16 = vld [vmem:[#allocation2] sm:$0xff] }
  0xf1   :  { %158 = vst.msk [vmem:[%s285_s3 + $0x8] sm:$0xff] %vm46_vm0, %v156_v15  ;;  %v155_v17 = vadd.f32 %v167_v13, %v146_v16 }
  0xf3   :  { %157 = vst.msk [vmem:[%s285_s3] sm:$0xff] %vm46_vm0, %v155_v17 }
  0xf4   :  { %163 = vsyncpa [#allocation4], 1 }
  0xf5   :  { %164 = vsyncpa [#allocation6], 1 }

// kernel: vit_predictor_forward.14
= control target key start
LH: loop header
LB: loop body
LE: loop exit
PB: predicated region body
PF: predicated region fallthrough
CT: control target
= control target key end

     0   :  { %s689_s12 = smov 0   ;;  %s691_s13 = smov 0   ;;  %s746_s0 = inlined_call_operand.vmem [shape: f32[8,8,8], index: 0, kind: input, shape index: {}]   ;;  %s747_s1 = inlined_call_operand.vmem [shape: f32[8,8,8], index: 1, kind: input, shape index: {}]   ;;  %s748_s2 = inlined_call_operand.vmem [shape: f32[8,8,8], index: 2, kind: input, shape index: {}]   ;;  %s749_s3 = inlined_call_operand.vmem [shape: f32[8,8,8], index: 3, kind: output, shape index: {}]  }
   0x1   :  { %s693_s14 = smov 0  }
   0x2 LB: > { %s32_s15 = sadd.s32 1, %s659_s13  ;;  %p581_p0 = scmp.ge.s32.totalorder %s663_s14, 1  ;;  %s663_s14 = sphi %s693_s14, %s13_s14   ;;  %s659_s13 = sphi %s691_s13, %s751_s13   ;;  %s655_s12 = sphi %s689_s12, %s750_s12  }
   0x3   : > { %p34_p1 = scmp.ge.s32.totalorder %s32_s15, 8  ;;  %p190_p2 = scmp.lt.s32.totalorder %s663_s14, 9 }
   0x5   : > { %s753_s15 = smov (%p34_p1, %s32_s15), 0  ;;  %p191_p3 = pnand %p581_p0, %p190_p2 }
   0x6   : > { %p232_p4 = scmp.lt.s32.totalorder (!%p191_p3), %s655_s12, 7 }
   0x7   : > { %194 = sbr.rel (%p191_p3) target bundleno = 785 (0x311), region = 32 }
   0xc   : > { %vm267_vm0 = vcmask 64512   ;;  %v665_v0 = vmov 0.0   ;;  %vm666_vm1 = vmmov 0   ;;  %s755_s12 = smov (!%p232_p4, %s655_s12), 7  ;;  %vm264_vm2 = vcmask 7168  }
   0xd   : > { %595 = vmatprep.subr.mxu0 %v665_v0  ;;  %268 = vst.msk [vmem:[#allocation4] sm:$0xff] %vm267_vm0, %v665_v0  ;;  %597 = vmatprep.mubr.msk.f32.mxu0 %vm666_vm1, %v665_v0  ;;  %s708_s16 = sshll.u32 %s755_s12, 3  ;;  %v667_v4 = vmov -inf   ;;  %v668_v8 = vmov 0  }
   0xe   : > { %600 = vmatprep.subr.mxu1 %v665_v0  ;;  %602 = vmatprep.mubr.msk.f32.mxu1 %vm666_vm1, %v665_v0  ;;  %s245_s19 = scalar_lea.vmem %s747_s1, %s708_s16  ;;  %s238_s22 = scalar_lea.vmem %s746_s0, %s708_s16  ;;  %265 = vst.msk [vmem:[#allocation2] sm:$0xff] %vm264_vm2, %v667_v4  ;;  %266 = vst.msk [vmem:[#allocation3] sm:$0xff] %vm264_vm2, %v665_v0 }
   0xf   : > { %v271_v1 = vld [vmem:[%s245_s19] sm:$0xff]  ;;  %633 = vset.pattern.permute.xlu0 %v668_v8  ;;  %634 = vset.pattern.permute.xlu1 %v668_v8  ;;  %s252_s25 = scalar_lea.vmem %s748_s2, %s708_s16  ;;  %s259_s28 = scalar_lea.vmem %s749_s3, %s708_s16 }
  0x10   : > { %v269_v2 = vld [vmem:[%s238_s22] sm:$0xff]  ;;  %596 = vmatpush3.xpose.msk.msra.mxu0 %vm267_vm0, %v271_v1 }
  0x11   : > { %v270_v3 = vmul.f32 0.35355338, %v269_v2  ;;  %v272_v13 = vld [vmem:[%s252_s25] sm:$0xff] }
  0x12   : > { %601 = vmatpush3.msra.mxu1 %v272_v13 }
  0x13   : > { %598 = vmatmul.mubr.msk.f32.vlgmr.msra.gmra.mxu0 %vm267_vm0, %v270_v3 }
  0x14   : > { %v374_v27 = vld [vmem:[#allocation4] sm:$0xff] }
  0x15   : > { %v350_v9 = vld [vmem:[#allocation2] sm:$0xff]  ;;  %v366_v21 = vld [vmem:[#allocation3] sm:$0xff] }
  0xd3   : > { %v346_v5 = vpop.f32.mrf.mxu0 }
  0xd4   : > { %v351_v6 = vsel %vm267_vm0, %v346_v5, -inf }
  0xd5   : > { %352 = vmax.xlane.f32.xlu0 %v351_v6  ;;  %v599_v7 = vpop.f32.mrf.mxu0 }
 0x15e   : > { %v353_v10 = vpop.xlane.xlu0 %352 }
 0x15f   : > { %v354_v11 = vmax.f32 %v350_v9, %v353_v10 }
 0x161   : > { %v355_v12 = vsub.f32 %v350_v9, %v354_v11  ;;  %456 = vst.msk [vmem:[#allocation2] sm:$0xff] %vm264_vm2, %v354_v11  ;;  %360 = vperm.xlu0 %633, %v354_v11  }
 0x163   : > { %v356_v18 = vmul.f32 1.442695, %v355_v12 }
 0x1dc   : > { %v361_v14 = vpop.permute.xlu0 %360 }
 0x1dd   : > { %v363_v15 = vsub.f32 %v346_v5, %v361_v14 }
 0x1df   : > { %v364_v16 = vmul.f32 1.442695, %v363_v15 }
 0x1e1   : > { %635 = vpow2.f32 %v364_v16 }
 0x1e2   : > { %637 = vpow2.f32 %v356_v18 }
 0x1ee   : > { %v636_v17 = vpop.eup %635 }
 0x1ef   : > { %603 = vmatmul.mubr.msk.f32.vlgmr.msra.gmra.mxu1 %vm267_vm0, %v636_v17  ;;  %v368_v19 = vsel %vm267_vm0, %v636_v17, 0.0  ;;  %v638_v20 = vpop.eup %637 }
 0x1f0   : > { %369 = vadd.xlane.f32.xlu1 %v368_v19  ;;  %v367_v22 = vmul.f32 %v638_v20, %v366_v21 }
 0x201   : > { %377 = vperm.xlu1 %634, %v638_v20  }
 0x279   : > { %v370_v23 = vpop.xlane.xlu1 %369 }
 0x27a   : > { %v371_v24 = vadd.f32 %v370_v23, %v367_v22 }
 0x27c   : > { %373 = vst.msk [vmem:[#allocation3] sm:$0xff] %vm264_vm2, %v371_v24 }
 0x27d   : > { %v378_v28 = vpop.permute.xlu1 %377 }
 0x27e   : > { %v380_v29 = vmul.f32 %v378_v28, %v374_v27 }
 0x283   : > { %v460_v25 = vld [vmem:[#allocation3] sm:$0xff] }
 0x284   : > { %639 = vrcp.f32 %v460_v25 }
 0x291   : > { %v640_v26 = vpop.eup %639 }
 0x292   : > { %465 = vperm.xlu1 %634, %v640_v26  }
 0x2af   : > { %v450_v30 = vpop.f32.mrf.mxu1 }
 0x2b0   : > { %v454_v31 = vadd.f32 %v450_v30, %v380_v29 }
 0x2b1   : > { %v604_v32 = vpop.f32.mrf.mxu1 }
 0x2b2   : > { %455 = vst.msk [vmem:[#allocation4] sm:$0xff] %vm267_vm0, %v454_v31 }
 0x2b9   : > { %v462_v33 = vld [vmem:[#allocation4] sm:$0xff] }
 0x30d   : > { %v466_v34 = vpop.permute.xlu1 %465 }
 0x30e   : > { %v468_v35 = vmul.f32 %v466_v34, %v462_v33 }
 0x310   : > { %469 = vst.msk [vmem:[%s259_s28] sm:$0xff] %vm267_vm0, %v468_v35 }
 0x311 PF: > { %s13_s14 = sadd.s32 1, %s663_s14   ;;  %s750_s12 = smov %s659_s13 }
 0x312   : > { %p10_p5 = scmp.ge.s32.totalorder %s13_s14, 10   ;;  %s751_s13 = smov %s753_s15 }
 0x314   :  { %12 = sbr.rel (!%p10_p5) target bundleno = 2 (0x2), region = 76 }

// kernel: vit_predictor_forward.15
= control target key start
LH: loop header
LB: loop body
LE: loop exit
PB: predicated region body
PF: predicated region fallthrough
CT: control target
= control target key end

     0   :  { %vm21_vm0 = vcmask 261120   ;;  %v163_v2 = vmov 0.0   ;;  %s230_s1 = inlined_call_operand.vmem [shape: f32[32,32], index: 1, kind: input, shape index: {}]   ;;  %s231_s0 = inlined_call_operand.vmem [shape: f32[16,32], index: 0, kind: input, shape index: {}]   ;;  %s232_s2 = inlined_call_operand.vmem [shape: f32[1,32], index: 2, kind: input, shape index: {}]   ;;  %s233_s3 = inlined_call_operand.vmem [shape: f32[16,32], index: 3, kind: input, shape index: {}]   ;;  %s234_s4 = inlined_call_operand.vmem [shape: f32[16,32], index: 4, kind: output, shape index: {}]  }
   0x1   :  { %v31_v0 = vld [vmem:[%s230_s1 + $0x18] sm:$0xff]  ;;  %v30_v1 = vld [vmem:[%s230_s1 + $0x10] sm:$0xff]  ;;  %23 = vst.msk [vmem:[#allocation2 + $0x8] sm:$0xff] %vm21_vm0, %v163_v2  ;;  %22 = vst.msk [vmem:[#allocation2] sm:$0xff] %vm21_vm0, %v163_v2 }
   0x2   :  { %151 = vmatprep.subr.mxu0 %v31_v0  ;;  %v26_v3 = vld [vmem:[%s231_s0] sm:$0xff]  ;;  %v29_v4 = vld [vmem:[%s230_s1 + $0x8] sm:$0xff] }
   0x3   :  { %152 = vmatpush3.msra.mxu0 %v31_v0  ;;  %159 = vmatprep.mubr.msk.f32.mxu0 %vm21_vm0, %v26_v3  ;;  %v28_v5 = vld [vmem:[%s230_s1] sm:$0xff]  ;;  %v27_v6 = vld [vmem:[%s231_s0 + $0x8] sm:$0xff] }
   0x4   :  { %153 = vmatprep.subr.mxu0 %v30_v1  ;;  %v144_v13 = vld [vmem:[%s232_s2] ss:$0 sm:$0xff]  ;;  %v133_v15 = vld [vmem:[%s233_s3 + $0x8] sm:$0xff] }
   0x5   :  { %154 = vmatpush3.msra.mxu0 %v30_v1  ;;  %v132_v18 = vld [vmem:[%s233_s3] sm:$0xff] }
   0x6   :  { %155 = vmatprep.subr.mxu0 %v29_v4 }
   0x7   :  { %156 = vmatpush3.msra.mxu0 %v29_v4 }
   0x8   :  { %157 = vmatprep.subr.mxu0 %v28_v5  ;;  %v25_v7 = vld [vmem:[#allocation2 + $0x8] sm:$0xff]  ;;  %v24_v9 = vld [vmem:[#allocation2] sm:$0xff] }
   0x9   :  { %158 = vmatpush3.msra.mxu0 %v28_v5 }
   0xa   :  { %160 = vmatmul.mubr.msk.f32.vlgmr.msra.gmra.mxu0 %vm21_vm0, %v27_v6 }
  0xca   :  { %v161_v8 = vpop.f32.mrf.mxu0 }
  0xcb   :  { %v115_v10 = vadd.f32 %v161_v8, %v25_v7 }
  0xcc   :  { %v105_v11 = vpop.f32.mrf.mxu0 }
  0xcd   :  { %117 = vst.msk [vmem:[#allocation2 + $0x8] sm:$0xff] %vm21_vm0, %v115_v10  ;;  %v114_v12 = vadd.f32 %v105_v11, %v24_v9 }
  0xcf   :  { %116 = vst.msk [vmem:[#allocation2] sm:$0xff] %vm21_vm0, %v114_v12 }
  0xd4   :  { %v122_v14 = vld [vmem:[#allocation2 + $0x8] sm:$0xff] }
  0xd5   :  { %v131_v16 = vadd.f32 %v144_v13, %v122_v14 }
  0xd6   :  { %v121_v17 = vld [vmem:[#allocation2] sm:$0xff] }
  0xd7   :  { %v135_v19 = vadd.f32 %v133_v15, %v131_v16  ;;  %v130_v20 = vadd.f32 %v144_v13, %v121_v17 }
  0xd9   :  { %137 = vst.msk [vmem:[%s234_s4 + $0x8] sm:$0xff] %vm21_vm0, %v135_v19  ;;  %v134_v21 = vadd.f32 %v132_v18, %v130_v20 }
  0xdb   :  { %136 = vst.msk [vmem:[%s234_s4] sm:$0xff] %vm21_vm0, %v134_v21 }

// kernel: vit_predictor_forward.17
= control target key start
LH: loop header
LB: loop body
LE: loop exit
PB: predicated region body
PF: predicated region fallthrough
CT: control target
= control target key end

     0   :  { %vm21_vm0 = vcmask 261120   ;;  %vm36_vm1 = vcmask 523264   ;;  %v180_v2 = vmov 0.0   ;;  %s259_s1 = inlined_call_operand.vmem [shape: f32[64,32], index: 1, kind: input, shape index: {}]   ;;  %s260_s0 = inlined_call_operand.vmem [shape: f32[16,64], index: 0, kind: input, shape index: {}]   ;;  %s261_s2 = inlined_call_operand.vmem [shape: f32[1,32], index: 2, kind: input, shape index: {}]   ;;  %s262_s3 = inlined_call_operand.vmem [shape: f32[16,32], index: 3, kind: input, shape index: {}]   ;;  %s263_s4 = inlined_call_operand.vmem [shape: f32[16,32], index: 4, kind: output, shape index: {}]  }
   0x1   :  { %v35_v0 = vld [vmem:[%s259_s1 + $0x38] sm:$0xff]  ;;  %v34_v1 = vld [vmem:[%s259_s1 + $0x30] sm:$0xff]  ;;  %23 = vst.msk [vmem:[#allocation2 + $0x8] sm:$0xff] %vm21_vm0, %v180_v2  ;;  %22 = vst.msk [vmem:[#allocation2] sm:$0xff] %vm21_vm0, %v180_v2 }
   0x2   :  { %160 = vmatprep.subr.mxu0 %v35_v0  ;;  %v33_v3 = vld [vmem:[%s259_s1 + $0x28] sm:$0xff]  ;;  %v26_v4 = vld [vmem:[%s260_s0] sm:$0xff]  ;;  %v31_v6 = vld [vmem:[%s259_s1 + $0x18] sm:$0xff] }
   0x3   :  { %161 = vmatpush3.msra.mxu0 %v35_v0  ;;  %176 = vmatprep.mubr.msk.f32.mxu0 %vm36_vm1, %v26_v4  ;;  %v32_v5 = vld [vmem:[%s259_s1 + $0x20] sm:$0xff]  ;;  %v30_v7 = vld [vmem:[%s259_s1 + $0x10] sm:$0xff]  ;;  %v29_v8 = vld [vmem:[%s259_s1 + $0x8] sm:$0xff] }
   0x4   :  { %162 = vmatprep.subr.mxu0 %v34_v1  ;;  %v28_v9 = vld [vmem:[%s259_s1] sm:$0xff]  ;;  %v27_v10 = vld [vmem:[%s260_s0 + $0x8] sm:$0xff] }
   0x5   :  { %163 = vmatpush3.msra.mxu0 %v34_v1  ;;  %v149_v17 = vld [vmem:[%s261_s2] ss:$0 sm:$0xff]  ;;  %v138_v19 = vld [vmem:[%s262_s3 + $0x8] sm:$0xff] }
   0x6   :  { %164 = vmatprep.subr.mxu0 %v33_v3  ;;  %v137_v21 = vld [vmem:[%s262_s3] sm:$0xff] }
   0x7   :  { %165 = vmatpush3.msra.mxu0 %v33_v3 }
   0x8   :  { %166 = vmatprep.subr.mxu0 %v32_v5  ;;  %v25_v11 = vld [vmem:[#allocation2 + $0x8] sm:$0xff]  ;;  %v24_v13 = vld [vmem:[#allocation2] sm:$0xff] }
   0x9   :  { %167 = vmatpush3.msra.mxu0 %v32_v5 }
   0xa   :  { %168 = vmatprep.subr.mxu0 %v31_v6 }
   0xb   :  { %169 = vmatpush3.msra.mxu0 %v31_v6 }
   0xc   :  { %170 = vmatprep.subr.mxu0 %v30_v7 }
   0xd   :  { %171 = vmatpush3.msra.mxu0 %v30_v7 }
   0xe   :  { %172 = vmatprep.subr.mxu0 %v29_v8 }
   0xf   :  { %173 = vmatpush3.msra.mxu0 %v29_v8 }
  0x10   :  { %174 = vmatprep.subr.mxu0 %v28_v9 }
  0x11   :  { %175 = vmatpush3.msra.mxu0 %v28_v9 }
  0x12   :  { %177 = vmatmul.mubr.msk.f32.vlgmr.msra.gmra.mxu0 %vm36_vm1, %v27_v10 }
  0xd2   :  { %v178_v12 = vpop.f32.mrf.mxu0 }
  0xd3   :  { %v119_v14 = vadd.f32 %v178_v12, %v25_v11 }
  0xd4   :  { %v109_v15 = vpop.f32.mrf.mxu0 }
  0xd5   :  { %122 = vst.msk [vmem:[#allocation2 + $0x8] sm:$0xff] %vm21_vm0, %v119_v14  ;;  %v118_v16 = vadd.f32 %v109_v15, %v24_v13 }
  0xd7   :  { %121 = vst.msk [vmem:[#allocation2] sm:$0xff] %vm21_vm0, %v118_v16 }
  0xdc   :  { %v127_v18 = vld [vmem:[#allocation2 + $0x8] sm:$0xff] }
  0xdd   :  { %v136_v20 = vadd.f32 %v149_v17, %v127_v18 }
  0xde   :  { %v126_v22 = vld [vmem:[#allocation2] sm:$0xff] }
  0xdf   :  { %v140_v23 = vadd.f32 %v138_v19, %v136_v20  ;;  %v135_v24 = vadd.f32 %v149_v17, %v126_v22 }
  0xe1   :  { %142 = vst.msk [vmem:[%s263_s4 + $0x8] sm:$0xff] %vm21_vm0, %v140_v23  ;;  %v139_v25 = vadd.f32 %v137_v21, %v135_v24 }
  0xe3   :  { %141 = vst.msk [vmem:[%s263_s4] sm:$0xff] %vm21_vm0, %v139_v25 }

// kernel: vit_predictor_forward.16
= control target key start
LH: loop header
LB: loop body
LE: loop exit
PB: predicated region body
PF: predicated region fallthrough
CT: control target
= control target key end

     0   :  { %vm24_vm0 = vcmask 261120   ;;  %vm214_vm2 = vcmask 523264   ;;  %s324_s0 = inlined_call_operand.vmem [shape: f32[16,32], index: 0, kind: input, shape index: {}]   ;;  %s325_s3 = inlined_call_operand.vmem [shape: f32[32,64], index: 3, kind: input, shape index: {}]   ;;  %s326_s1 = inlined_call_operand.vmem [shape: f32[1,32], index: 1, kind: input, shape index: {}]   ;;  %s327_s2 = inlined_call_operand.vmem [shape: f32[1,32], index: 2, kind: input, shape index: {}]   ;;  %s328_s4 = inlined_call_operand.vmem [shape: f32[1,64], index: 4, kind: input, shape index: {}]   ;;  %s329_s5 = inlined_call_operand.vmem [shape: f32[16,64], index: 5, kind: output, shape index: {}]  }
   0x1   :  { %v20_v0 = vld [vmem:[%s324_s0] sm:$0xff]  ;;  %v21_v1 = vld [vmem:[%s324_s0 + $0x8] sm:$0xff]  ;;  %v71_v14 = vld [vmem:[%s325_s3 + $0x18] sm:$0xff] }
   0x2   :  { %v25_v2 = vsel %vm24_vm0, %v20_v0, 0.0  ;;  %v28_v3 = vsel %vm24_vm0, %v21_v1, 0.0  ;;  %v70_v15 = vld [vmem:[%s325_s3 + $0x10] sm:$0xff]  ;;  %232 = vmatprep.subr.mxu0 %v71_v14  ;;  %v69_v16 = vld [vmem:[%s325_s3 + $0x8] sm:$0xff]  ;;  %v68_v17 = vld [vmem:[%s325_s3] sm:$0xff] }
   0x3   :  { %26 = vadd.xlane.f32.xlu0 %v25_v2  ;;  %233 = vmatpush3.msra.mxu0 %v71_v14  ;;  %v221_v25 = vld [vmem:[%s326_s1] ss:$0 sm:$0xff] }
   0x4   :  { %234 = vmatprep.subr.mxu0 %v70_v15  ;;  %v222_v27 = vld [vmem:[%s327_s2] ss:$0 sm:$0xff] }
   0x5   :  { %235 = vmatpush3.msra.mxu0 %v70_v15  ;;  %v223_v34 = vld [vmem:[%s328_s4] ss:$0 sm:$0xff] }
   0x6   :  { %236 = vmatprep.subr.mxu0 %v69_v16 }
   0x7   :  { %29 = vadd.xlane.f32.xlu0 %v28_v3  ;;  %237 = vmatpush3.msra.mxu0 %v69_v16 }
   0x8   :  { %238 = vmatprep.subr.mxu0 %v68_v17 }
   0x9   :  { %239 = vmatpush3.msra.mxu0 %v68_v17 }
  0x8c   :  { %v27_v4 = vpop.xlane.xlu0 %26 }
  0x8d   :  { %v32_v5 = vmul.f32 0.03125, %v27_v4 }
  0x8f   :  { %v34_v6 = vsub.f32 %v20_v0, %v32_v5 }
  0x90   :  { %v30_v7 = vpop.xlane.xlu0 %29 }
  0x91   :  { %v33_v8 = vmul.f32 0.03125, %v30_v7  ;;  %v36_v9 = vmul.f32 %v34_v6, %v34_v6 }
  0x93   :  { %v35_v10 = vsub.f32 %v21_v1, %v33_v8  ;;  %v38_v11 = vsel %vm24_vm0, %v36_v9, 0.0 }
  0x94   :  { %39 = vadd.xlane.f32.xlu1 %v38_v11 }
  0x95   :  { %v37_v12 = vmul.f32 %v35_v10, %v35_v10 }
  0x97   :  { %v41_v13 = vsel %vm24_vm0, %v37_v12, 0.0 }
  0x98   :  { %42 = vadd.xlane.f32.xlu1 %v41_v13 }
 0x11d   :  { %v40_v18 = vpop.xlane.xlu1 %39 }
 0x11e   :  { %v44_v19 = vmul.f32 0.03125, %v40_v18 }
 0x120   :  { %v46_v20 = vadd.f32 1e-05, %v44_v19 }
 0x121   :  { %v43_v21 = vpop.xlane.xlu1 %42 }
 0x122   :  { %243 = vrsqrt.f32 %v46_v20  ;;  %v45_v22 = vmul.f32 0.03125, %v43_v21 }
 0x124   :  { %v47_v23 = vadd.f32 1e-05, %v45_v22 }
 0x126   :  { %245 = vrsqrt.f32 %v47_v23 }
 0x12f   :  { %v244_v24 = vpop.eup %243 }
 0x130   :  { %v50_v26 = vmul.f32 %v244_v24, %v34_v6 }
 0x132   :  { %v58_v28 = vmul.f32 %v221_v25, %v50_v26 }
 0x133   :  { %v246_v29 = vpop.eup %245 }
 0x134   :  { %v51_v30 = vmul.f32 %v246_v29, %v35_v10  ;;  %v66_v31 = vadd.f32 %v222_v27, %v58_v28 }
 0x136   :  { %v59_v32 = vmul.f32 %v221_v25, %v51_v30  ;;  %240 = vmatprep.mubr.msk.f32.mxu0 %vm24_vm0, %v66_v31 }
 0x138   :  { %v67_v33 = vadd.f32 %v222_v27, %v59_v32 }
 0x13a   :  { %241 = vmatmul.mubr.msk.f32.vlgmr.msra.gmra.mxu0 %vm24_vm0, %v67_v33 }
 0x1fa   :  { %v242_v35 = vpop.f32.mrf.mxu0 }
 0x1fb   :  { %v157_v36 = vadd.f32 %v242_v35, %v223_v34 }
 0x1fc   :  { %v151_v37 = vpop.f32.mrf.mxu0 }
 0x1fd   :  { %v161_v38 = vmul.f32 0.70710677, %v157_v36  ;;  %v152_v39 = vadd.f32 %v223_v34, %v151_v37  ;;  %v209_v17 = vmul.f32 0.5, %v157_v36 }
 0x1ff   :  { %v163_v40 = vand.u32 2147483647, %v161_v38  ;;  %v160_v41 = vmul.f32 0.70710677, %v152_v39  ;;  %vm203_vm1 = vcmp.ge.f32.partialorder %v161_v38, 0.0  ;;  %v208_v22 = vmul.f32 0.5, %v152_v39 }
 0x201   :  { %v165_v42 = vmul.f32 0.3275911, %v163_v40  ;;  %v162_v43 = vand.u32 2147483647, %v160_v41  ;;  %v191_v47 = vsub.f32 0.0, %v163_v40  ;;  %vm202_vm3 = vcmp.ge.f32.partialorder %v160_v41, 0.0 }
 0x203   :  { %v167_v44 = vadd.f32 1.0, %v165_v42  ;;  %v164_v45 = vmul.f32 0.3275911, %v162_v43  ;;  %v190_v48 = vsub.f32 0.0, %v162_v43  ;;  %v193_v49 = vmul.f32 %v191_v47, %v163_v40 }
 0x205   :  { %247 = vrcp.f32 %v167_v44  ;;  %v166_v46 = vadd.f32 1.0, %v164_v45  ;;  %v192_v51 = vmul.f32 %v190_v48, %v162_v43  ;;  %v196_v53 = vmul.f32 1.442695, %v193_v49 }
 0x207   :  { %249 = vrcp.f32 %v166_v46  ;;  %v194_v57 = vmul.f32 1.442695, %v192_v51 }
 0x208   :  { %251 = vpow2.f32 %v196_v53 }
 0x209   :  { %253 = vpow2.f32 %v194_v57 }
 0x212   :  { %v248_v50 = vpop.eup %247 }
 0x213   :  { %v173_v52 = vmul.f32 1.0614054, %v248_v50 }
 0x214   :  { %v250_v54 = vpop.eup %249 }
 0x215   :  { %v175_v55 = vadd.f32 -1.4531521, %v173_v52  ;;  %v172_v56 = vmul.f32 1.0614054, %v250_v54  ;;  %v252_v7 = vpop.eup %251 }
 0x216   :  { %v254_v11 = vpop.eup %253 }
 0x217   :  { %v177_v58 = vmul.f32 %v248_v50, %v175_v55  ;;  %v174_v59 = vadd.f32 -1.4531521, %v172_v56 }
 0x219   :  { %v179_v60 = vadd.f32 1.4214138, %v177_v58  ;;  %v176_v61 = vmul.f32 %v250_v54, %v174_v59 }
 0x21b   :  { %v181_v62 = vmul.f32 %v248_v50, %v179_v60  ;;  %v178_v63 = vadd.f32 1.4214138, %v176_v61 }
 0x21d   :  { %v183_v0 = vadd.f32 -0.28449672, %v181_v62  ;;  %v180_v1 = vmul.f32 %v250_v54, %v178_v63 }
 0x21f   :  { %v185_v2 = vmul.f32 %v248_v50, %v183_v0  ;;  %v182_v3 = vadd.f32 -0.28449672, %v180_v1 }
 0x221   :  { %v187_v4 = vadd.f32 0.2548296, %v185_v2  ;;  %v184_v5 = vmul.f32 %v250_v54, %v182_v3 }
 0x223   :  { %v189_v6 = vmul.f32 %v248_v50, %v187_v4  ;;  %v186_v8 = vadd.f32 0.2548296, %v184_v5 }
 0x225   :  { %v199_v9 = vmul.f32 %v252_v7, %v189_v6  ;;  %v188_v10 = vmul.f32 %v250_v54, %v186_v8 }
 0x227   :  { %v201_v12 = vsub.f32 1.0, %v199_v9  ;;  %v198_v13 = vmul.f32 %v254_v11, %v188_v10 }
 0x229   :  { %v205_v14 = vsub.f32 0.0, %v201_v12  ;;  %v200_v15 = vsub.f32 1.0, %v198_v13 }
 0x22b   :  { %v207_v16 = vsel %vm203_vm1, %v201_v12, %v205_v14  ;;  %v204_v19 = vsub.f32 0.0, %v200_v15 }
 0x22c   :  { %v211_v18 = vadd.f32 1.0, %v207_v16 }
 0x22d   :  { %v206_v21 = vsel %vm202_vm3, %v200_v15, %v204_v19 }
 0x22e   :  { %v213_v20 = vmul.f32 %v211_v18, %v209_v17  ;;  %v210_v23 = vadd.f32 1.0, %v206_v21 }
 0x230   :  { %216 = vst.msk [vmem:[%s329_s5 + $0x8] sm:$0xff] %vm214_vm2, %v213_v20  ;;  %v212_v24 = vmul.f32 %v210_v23, %v208_v22 }
 0x232   :  { %215 = vst.msk [vmem:[%s329_s5] sm:$0xff] %vm214_vm2, %v212_v24 }

// kernel: vit_predictor_forward.23
= control target key start
LH: loop header
LB: loop body
LE: loop exit
PB: predicated region body
PF: predicated region fallthrough
CT: control target
= control target key end

     0   :  { %vm25_vm0 = vcmask 261120   ;;  %s301_s0 = inlined_call_operand.vmem [shape: f32[16,32], index: 0, kind: input, shape index: {}]   ;;  %s302_s1 = inlined_call_operand.vmem [shape: f32[1,32], index: 1, kind: input, shape index: {}]   ;;  %s303_s2 = inlined_call_operand.vmem [shape: f32[1,32], index: 2, kind: input, shape index: {}, may-alias: {2,4}]   ;;  %s304_s3 = inlined_call_operand.vmem [shape: f32[32,32], index: 3, kind: input, shape index: {}]   ;;  %s305_s4 = inlined_call_operand.vmem [shape: f32[1,32], index: 4, kind: input, shape index: {}, may-alias: {2,4}]   ;;  %s306_s5 = inlined_call_operand.hbm [shape: f32[16,32], index: 5, kind: output, shape index: {}]  }
   0x1   :  { %v21_v0 = vld [vmem:[%s301_s0] sm:$0xff]  ;;  %v22_v1 = vld [vmem:[%s301_s0 + $0x8] sm:$0xff] }
   0x2   :  { %10 = vsyncpa [#allocation3], 0  ;;  %v26_v2 = vsel %vm25_vm0, %v21_v0, 0.0  ;;  %v29_v3 = vsel %vm25_vm0, %v22_v1, 0.0  ;;  %v72_v14 = vld [vmem:[%s304_s3 + $0x18] sm:$0xff]  ;;  %v71_v15 = vld [vmem:[%s304_s3 + $0x10] sm:$0xff] }
   0x3   :  { %27 = vadd.xlane.f32.xlu0 %v26_v2  ;;  %190 = vmatprep.subr.mxu0 %v72_v14  ;;  %v70_v16 = vld [vmem:[%s304_s3 + $0x8] sm:$0xff]  ;;  %v69_v17 = vld [vmem:[%s304_s3] sm:$0xff] }
   0x4   :  { %191 = vmatpush3.msra.mxu0 %v72_v14  ;;  %v179_v25 = vld [vmem:[%s302_s1] ss:$0 sm:$0xff]  ;;  %s230_s1 = smov [#allocation2]  }
   0x5   :  { %192 = vmatprep.subr.mxu0 %v71_v15  ;;  %v180_v27 = vld [vmem:[%s303_s2] ss:$0 sm:$0xff]  ;;  %s168_s9 = sshll.u32 %s230_s1, 4  ;;  %s169_s9 = int_to_ptr.vmem [resolvable:$true] %s168_s9 }
   0x6   :  { %193 = vmatpush3.msra.mxu0 %v71_v15  ;;  %v181_v34 = vld [vmem:[%s305_s4] ss:$0 sm:$0xff]  ;;  %s208_s2 = scalar_lea.vmem %s169_s9, 256  ;;  %p213_p1 = scmp.lt.s32.totalorder %s169_s9, %s169_s9 }
   0x7   :  { %30 = vadd.xlane.f32.xlu0 %v29_v3  ;;  %194 = vmatprep.subr.mxu0 %v70_v16  ;;  %p209_p0 = scmp.ne.s32.totalorder %s169_s9, %s208_s2  ;;  %p214_p2 = scmp.lt.s32.totalorder %s208_s2, %s208_s2 }
   0x8   :  { %195 = vmatpush3.msra.mxu0 %v70_v16 }
   0x9   :  { %196 = vmatprep.subr.mxu0 %v69_v17  ;;  %p215_p3 = por %p214_p2, %p213_p1 }
   0xa   :  { %197 = vmatpush3.msra.mxu0 %v69_v17 }
   0xb   :  { %p216_p4 = pnand %p215_p3, %p209_p0 }
  0x8c   :  { %v28_v4 = vpop.xlane.xlu0 %27 }
  0x8d   :  { %v33_v5 = vmul.f32 0.03125, %v28_v4 }
  0x8f   :  { %v35_v6 = vsub.f32 %v21_v0, %v33_v5 }
  0x90   :  { %v31_v7 = vpop.xlane.xlu0 %30 }
  0x91   :  { %v34_v8 = vmul.f32 0.03125, %v31_v7  ;;  %v37_v9 = vmul.f32 %v35_v6, %v35_v6 }
  0x93   :  { %v36_v10 = vsub.f32 %v22_v1, %v34_v8  ;;  %v39_v11 = vsel %vm25_vm0, %v37_v9, 0.0 }
  0x94   :  { %40 = vadd.xlane.f32.xlu1 %v39_v11 }
  0x95   :  { %v38_v12 = vmul.f32 %v36_v10, %v36_v10 }
  0x97   :  { %v42_v13 = vsel %vm25_vm0, %v38_v12, 0.0 }
  0x98   :  { %43 = vadd.xlane.f32.xlu1 %v42_v13 }
 0x11d   :  { %v41_v18 = vpop.xlane.xlu1 %40 }
 0x11e   :  { %v45_v19 = vmul.f32 0.03125, %v41_v18 }
 0x120   :  { %v47_v20 = vadd.f32 1e-05, %v45_v19 }
 0x121   :  { %v44_v21 = vpop.xlane.xlu1 %43 }
 0x122   :  { %204 = vrsqrt.f32 %v47_v20  ;;  %v46_v22 = vmul.f32 0.03125, %v44_v21 }
 0x124   :  { %v48_v23 = vadd.f32 1e-05, %v46_v22 }
 0x126   :  { %206 = vrsqrt.f32 %v48_v23 }
 0x12f   :  { %v205_v24 = vpop.eup %204 }
 0x130   :  { %v51_v26 = vmul.f32 %v205_v24, %v35_v6 }
 0x132   :  { %v59_v28 = vmul.f32 %v179_v25, %v51_v26 }
 0x133   :  { %v207_v29 = vpop.eup %206 }
 0x134   :  { %v52_v30 = vmul.f32 %v207_v29, %v36_v10  ;;  %v67_v31 = vadd.f32 %v180_v27, %v59_v28 }
 0x136   :  { %v60_v32 = vmul.f32 %v179_v25, %v52_v30  ;;  %198 = vmatprep.mubr.msk.f32.mxu0 %vm25_vm0, %v67_v31 }
 0x138   :  { %v68_v33 = vadd.f32 %v180_v27, %v60_v32 }
 0x13a   :  { %199 = vmatmul.mubr.msk.f32.vlgmr.msra.gmra.mxu0 %vm25_vm0, %v68_v33 }
 0x1fa   :  { %v200_v35 = vpop.f32.mrf.mxu0 }
 0x1fb   :  { %v158_v36 = vadd.f32 %v200_v35, %v181_v34 }
 0x1fc   :  { %v152_v37 = vpop.f32.mrf.mxu0 }
 0x1fd   :  { %162 = vst.msk [vmem:[#allocation2 + $0x8] sm:$0xff] %vm25_vm0, %v158_v36  ;;  %v153_v38 = vadd.f32 %v181_v34, %v152_v37 }
 0x1ff   :  { %161 = vst.msk [vmem:[#allocation2] sm:$0xff] %vm25_vm0, %v153_v38 }
 0x200   :  { %219 = shalt.err (!%p216_p4)
}
 0x201   :  { %s231_s10 = smov 128   ;;  %s232_s4 = smov 8  }
 0x202   :  { %174 = dma.vmem_to_hbm [thread:$0]  %s169_s9, 256, %s306_s5, [#allocation3], %s231_s10, %s231_s10, %s232_s4  }
 0x203   :  { %228 = dma.done.wait [#allocation3], 256  }
 0x204   :  { %229 = vsyncadd [#allocation3], 4294967040 }
 0x205   :  { %178 = vsyncpa [#allocation3], 1 }

</bundles_post_ra>
